<compile_context>
chip_gen: v7x
topology: tpu7x:2x2x1
jax: 0.10.0
libtpu: 0.0.40
codegen_flags: <defaults>
</compile_context>

<pallas_src>
import functools
import math

import jax
import jax.numpy as jnp
from jax.experimental import pallas as pl
from jax.experimental.pallas import tpu as pltpu


def _round_up(n, m):
    return ((n + m - 1) // m) * m


def _make_kernel(x_size, w_size, K, head_pad):
    qz_off = 2 * x_size + 2 * w_size  # column where the qz logits start

    def mm(a, w):
        # bf16 x bf16 on the MXU, f32 accumulate.
        return jnp.dot(a.astype(w.dtype), w, preferred_element_type=jnp.float32)

    def kernel(x_ref,
               enc_w, enc_b,
               head_w, head_b,
               h1_w, h1_b,
               prior_w, prior_b,
               dec_w, dec_b,
               y_w, y_b,
               enc_o, prior_o, y_o):
        x = x_ref[...]

        # ----------------- encoder trunk: h = ReLU(X @ W + b) -----------------
        h = jnp.maximum(mm(x, enc_w[...]) + enc_b[...], 0.0)

        # ------- fused heads: [mu_x | logvar_x | mu_w | logvar_w | qz | pad] --
        fused = mm(h, head_w[...]) + head_b[...]          # (B, head_pad)

        # softmax over the K qz logits
        logits = fused[:, qz_off:qz_off + K]
        m = jnp.max(logits, axis=-1, keepdims=True)
        e = jnp.exp(logits - m)
        qz = e * pl.reciprocal(jnp.sum(e, axis=-1, keepdims=True), approx=True)

        # one lane-dense store: same layout as `fused`, qz columns softmaxed
        parts = [fused[:, :qz_off], qz]
        tail = head_pad - (qz_off + K)
        if tail > 0:
            parts.append(fused[:, qz_off + K:])           # zero pad columns
        enc_o[...] = jnp.concatenate(parts, axis=-1)

        # ------------- reparameterize (eval mode: z = mu) ---------------------
        mu_x = fused[:, :x_size]
        mu_w_ = fused[:, 2 * x_size:2 * x_size + w_size]

        # ------------- priorGenerator: all 2K heads in one matmul -------------
        ht = jnp.tanh(mm(mu_w_, h1_w[...]) + h1_b[...])
        prior_o[...] = mm(ht, prior_w[...]) + prior_b[...]   # (B, prior_pad)

        # ------------- decoder: mu_y / logvar_y fused --------------------------
        hd = jnp.maximum(mm(mu_x, dec_w[...]) + dec_b[...], 0.0)
        y_o[...] = mm(hd, y_w[...]) + y_b[...]               # (B, 1024)

    return kernel


def init_params(key, x_size, w_size, K):
    """Deterministic PyTorch-default-style (uniform +/- 1/sqrt(fan_in)) init.

    Linear weights are stored pre-transposed as [in, out]; biases as [1, out].
    """
    w_half = w_size // 2

    def linear(k, fan_in, fan_out):
        kw, kb = jax.random.split(k)
        s = 1.0 / (fan_in ** 0.5)
        w = jax.random.uniform(kw, (fan_in, fan_out), jnp.float32, -s, s)
        b = jax.random.uniform(kb, (1, fan_out), jnp.float32, -s, s)
        return w, b

    keys = jax.random.split(key, 12 + 2 * K)
    enc_w, enc_b = linear(keys[0], 512, 256)
    mux_w, mux_b = linear(keys[1], 256, x_size)
    lvx_w, lvx_b = linear(keys[2], 256, x_size)
    muw_w, muw_b = linear(keys[3], 256, w_size)
    lvw_w, lvw_b = linear(keys[4], 256, w_size)
    qz_w, qz_b = linear(keys[5], 256, K)
    h1_w, h1_b = linear(keys[6], w_size, w_half)
    dec_w, dec_b = linear(keys[7], x_size, 256)
    muy_w, muy_b = linear(keys[8], 256, 512)
    lvy_w, lvy_b = linear(keys[9], 256, 512)

    mupx_ws, mupx_bs, lvpx_ws, lvpx_bs = [], [], [], []
    for i in range(K):
        w, b = linear(keys[12 + i], w_half, x_size)
        mupx_ws.append(w)
        mupx_bs.append(b)
        w, b = linear(keys[12 + K + i], w_half, x_size)
        lvpx_ws.append(w)
        lvpx_bs.append(b)
    mupx_w = jnp.stack(mupx_ws)               # (K, w_half, x_size)
    mupx_b = jnp.stack(mupx_bs)               # (K, 1, x_size)
    lvpx_w = jnp.stack(lvpx_ws)
    lvpx_b = jnp.stack(lvpx_bs)

    return (
        enc_w, enc_b,
        mux_w, mux_b,
        lvx_w, lvx_b,
        muw_w, muw_b,
        lvw_w, lvw_b,
        qz_w, qz_b,
        h1_w, h1_b,
        mupx_w, mupx_b,
        lvpx_w, lvpx_b,
        dec_w, dec_b,
        muy_w, muy_b,
        lvy_w, lvy_b,
    )


def _pack_params(params, x_size, w_size, K, head_pad, prior_pad):
    """Fuse per-head weights into wide lane-dense matrices; weights -> bf16."""
    (enc_w, enc_b,
     mux_w, mux_b,
     lvx_w, lvx_b,
     muw_w, muw_b,
     lvw_w, lvw_b,
     qz_w, qz_b,
     h1_w, h1_b,
     mupx_w, mupx_b,
     lvpx_w, lvpx_b,
     dec_w, dec_b,
     muy_w, muy_b,
     lvy_w, lvy_b) = params

    def pad_cols(a, n):
        return jnp.pad(a, ((0, 0), (0, n - a.shape[1])))

    # encoder heads: [mu_x | logvar_x | mu_w | logvar_w | qz] -> pad to head_pad
    head_w = pad_cols(
        jnp.concatenate([mux_w, lvx_w, muw_w, lvw_w, qz_w], axis=1), head_pad)
    head_b = pad_cols(
        jnp.concatenate([mux_b, lvx_b, muw_b, lvw_b, qz_b], axis=1), head_pad)

    # prior heads: [mu_px_0 ... mu_px_{K-1} | lv_px_0 ... lv_px_{K-1}]
    mupx_flat_w = jnp.concatenate([mupx_w[i] for i in range(K)], axis=1)
    lvpx_flat_w = jnp.concatenate([lvpx_w[i] for i in range(K)], axis=1)
    prior_w = pad_cols(jnp.concatenate([mupx_flat_w, lvpx_flat_w], axis=1),
                       prior_pad)
    mupx_flat_b = jnp.concatenate([mupx_b[i] for i in range(K)], axis=1)
    lvpx_flat_b = jnp.concatenate([lvpx_b[i] for i in range(K)], axis=1)
    prior_b = pad_cols(jnp.concatenate([mupx_flat_b, lvpx_flat_b], axis=1),
                       prior_pad)

    # decoder heads: [mu_y | logvar_y]
    y_w = jnp.concatenate([muy_w, lvy_w], axis=1)
    y_b = jnp.concatenate([muy_b, lvy_b], axis=1)

    bf = lambda w: w.astype(jnp.bfloat16)
    return (bf(enc_w), enc_b,
            bf(head_w), head_b,
            bf(h1_w), h1_b,
            bf(prior_w), prior_b,
            bf(dec_w), dec_b,
            bf(y_w), y_b)


@functools.partial(jax.jit, static_argnames=("x_size", "w_size", "K"))
def tvsum_gist_forward(X, params, *, x_size, w_size, K):
    B = X.shape[0]
    w_half = w_size // 2
    head_dim = 2 * x_size + 2 * w_size + K
    head_pad = max(128, _round_up(head_dim, 128))
    prior_dim = 2 * K * x_size
    prior_pad = max(128, _round_up(prior_dim, 128))

    packed = _pack_params(params, x_size, w_size, K, head_pad, prior_pad)
    args = (X,) + packed

    out_shapes = (
        jax.ShapeDtypeStruct((B, head_pad), jnp.float32),   # encoder head slab
        jax.ShapeDtypeStruct((B, prior_pad), jnp.float32),  # prior head slab
        jax.ShapeDtypeStruct((B, 1024), jnp.float32),       # [mu_y | logvar_y]
    )

    in_bytes = sum(int(math.prod(a.shape)) * a.dtype.itemsize for a in args)
    out_bytes = sum(int(math.prod(s.shape)) * jnp.dtype(s.dtype).itemsize
                    for s in out_shapes)
    flops = 2 * B * (512 * 256 + 256 * head_pad + w_size * w_half
                     + w_half * prior_pad + x_size * 256 + 256 * 1024)
    cost = pl.CostEstimate(flops=flops,
                           transcendentals=B * (K + w_half),
                           bytes_accessed=in_bytes + out_bytes)

    vmem = pl.BlockSpec(memory_space=pltpu.MemorySpace.VMEM)

    enc_slab, prior_slab, y_slab = pl.pallas_call(
        _make_kernel(x_size, w_size, K, head_pad),
        out_shape=out_shapes,
        in_specs=[vmem] * len(args),
        out_specs=tuple(vmem for _ in out_shapes),
        cost_estimate=cost,
    )(*args)

    # ---------------- glue: restore PyTorch output layout ----------------
    mu_x = enc_slab[:, :x_size]
    logvar_x = enc_slab[:, x_size:2 * x_size]
    mu_w = enc_slab[:, 2 * x_size:2 * x_size + w_size]
    logvar_w = enc_slab[:, 2 * x_size + w_size:2 * (x_size + w_size)]
    qz = enc_slab[:, 2 * (x_size + w_size):2 * (x_size + w_size) + K]

    prior = prior_slab[:, :prior_dim].reshape(B, 2, K, x_size)
    mu_px = jnp.transpose(prior[:, 0], (0, 2, 1))        # (B, x_size, K)
    logvar_px = jnp.transpose(prior[:, 1], (0, 2, 1))    # (B, x_size, K)

    mu_y = y_slab[:, :512]
    logvar_y = y_slab[:, 512:]

    x_sample = mu_x  # eval-mode reparameterize: z = mu (alias, no extra store)
    Y = (mu_y, logvar_y)
    return mu_x, logvar_x, mu_px, logvar_px, qz, Y, mu_w, logvar_w, x_sample


def _reference_forward(X, params, x_size, w_size, K):
    """Pure-JAX f32 reference (eval-mode) for tolerance checking."""
    (enc_w, enc_b, mux_w, mux_b, lvx_w, lvx_b, muw_w, muw_b, lvw_w, lvw_b,
     qz_w, qz_b, h1_w, h1_b, mupx_w, mupx_b, lvpx_w, lvpx_b,
     dec_w, dec_b, muy_w, muy_b, lvy_w, lvy_b) = params
    h = jnp.maximum(X @ enc_w + enc_b, 0.0)
    qz = jax.nn.softmax(h @ qz_w + qz_b, axis=1)
    mu_x = h @ mux_w + mux_b
    logvar_x = h @ lvx_w + lvx_b
    mu_w = h @ muw_w + muw_b
    logvar_w = h @ lvw_w + lvw_b
    ht = jnp.tanh(mu_w @ h1_w + h1_b)
    mu_px = jnp.stack([ht @ mupx_w[i] + mupx_b[i] for i in range(K)], axis=-1)
    logvar_px = jnp.stack([ht @ lvpx_w[i] + lvpx_b[i] for i in range(K)],
                          axis=-1)
    hd = jnp.maximum(mu_x @ dec_w + dec_b, 0.0)
    mu_y = hd @ muy_w + muy_b
    logvar_y = hd @ lvy_w + lvy_b
    return mu_x, logvar_x, mu_px, logvar_px, qz, (mu_y, logvar_y), mu_w, \
        logvar_w, mu_x


if __name__ == "__main__":
    B, X_SIZE, W_SIZE, K = 8, 32, 32, 4

    key = jax.random.PRNGKey(0)
    kx, kp = jax.random.split(key)
    X = jax.random.normal(kx, (B, 512), dtype=jnp.float32)
    params = init_params(kp, X_SIZE, W_SIZE, K)

    out = tvsum_gist_forward(X, params, x_size=X_SIZE, w_size=W_SIZE, K=K)
    jax.block_until_ready(out)

    mu_x, logvar_x, mu_px, logvar_px, qz, Y, mu_w, logvar_w, x_sample = out
    assert mu_x.shape == (B, X_SIZE)
    assert logvar_x.shape == (B, X_SIZE)
    assert mu_px.shape == (B, X_SIZE, K)
    assert logvar_px.shape == (B, X_SIZE, K)
    assert qz.shape == (B, K)
    assert Y[0].shape == (B, 512) and Y[1].shape == (B, 512)
    assert mu_w.shape == (B, W_SIZE) and logvar_w.shape == (B, W_SIZE)
    assert x_sample.shape == (B, X_SIZE)

    # numerical check vs f32 reference (bf16 weights => loose tolerance)
    ref = _reference_forward(X, params, X_SIZE, W_SIZE, K)
    kernel_flat = (mu_x, logvar_x, mu_px, logvar_px, qz, Y[0], Y[1],
                   mu_w, logvar_w, x_sample)
    ref_flat = (ref[0], ref[1], ref[2], ref[3], ref[4], ref[5][0], ref[5][1],
                ref[6], ref[7], ref[8])
    for a, b in zip(kernel_flat, ref_flat):
        assert bool(jnp.allclose(a, b, rtol=5e-2, atol=5e-2)), "mismatch vs ref"

    print("KERNEL_OK")
</pallas_src>

<mosaic_0001>
module attributes {stable_mosaic.version = 11 : i64} {
  func.func @kernel(%arg0: memref<8x512xf32, #tpu.memory_space<vmem>>, %arg1: memref<512x256xbf16, #tpu.memory_space<vmem>>, %arg2: memref<1x256xf32, #tpu.memory_space<vmem>>, %arg3: memref<256x256xbf16, #tpu.memory_space<vmem>>, %arg4: memref<1x256xf32, #tpu.memory_space<vmem>>, %arg5: memref<32x16xbf16, #tpu.memory_space<vmem>>, %arg6: memref<1x16xf32, #tpu.memory_space<vmem>>, %arg7: memref<16x256xbf16, #tpu.memory_space<vmem>>, %arg8: memref<1x256xf32, #tpu.memory_space<vmem>>, %arg9: memref<32x256xbf16, #tpu.memory_space<vmem>>, %arg10: memref<1x256xf32, #tpu.memory_space<vmem>>, %arg11: memref<256x1024xbf16, #tpu.memory_space<vmem>>, %arg12: memref<1x1024xf32, #tpu.memory_space<vmem>>, %arg13: memref<8x256xf32, #tpu.memory_space<vmem>>, %arg14: memref<8x256xf32, #tpu.memory_space<vmem>>, %arg15: memref<8x1024xf32, #tpu.memory_space<vmem>>) attributes {dimension_semantics = [], scalar_prefetch = 0 : i64, scratch_operands = 0 : i64, tpu.core_type = #tpu.core_type<tc>} {
    %c0 = arith.constant 0 : index
    %c0_0 = arith.constant 0 : index
    %0 = vector.load %arg0[%c0, %c0_0] : memref<8x512xf32, #tpu.memory_space<vmem>>, vector<8x512xf32>
    %c0_1 = arith.constant 0 : index
    %c0_2 = arith.constant 0 : index
    %1 = vector.load %arg1[%c0_1, %c0_2] : memref<512x256xbf16, #tpu.memory_space<vmem>>, vector<512x256xbf16>
    %2 = arith.truncf %0 : vector<8x512xf32> to vector<8x512xbf16>
    %cst = arith.constant dense<0.000000e+00> : vector<8x256xf32>
    %3 = tpu.matmul %2, %1, %cst {dimension_numbers = #tpu.dot_dimension_numbers<[1], [0], [0], [1], [0, 0, 1, 1], [], []>} : vector<8x512xbf16>, vector<512x256xbf16>, vector<8x256xf32> -> vector<8x256xf32>
    %c0_3 = arith.constant 0 : index
    %c0_4 = arith.constant 0 : index
    %4 = vector.load %arg2[%c0_3, %c0_4] : memref<1x256xf32, #tpu.memory_space<vmem>>, vector<1x256xf32>
    %5 = vector.broadcast %4 : vector<1x256xf32> to vector<8x256xf32>
    %6 = arith.addf %3, %5 : vector<8x256xf32>
    %cst_5 = arith.constant 0.000000e+00 : f32
    %7 = vector.broadcast %cst_5 : f32 to vector<8x256xf32>
    %8 = arith.maximumf %6, %7 : vector<8x256xf32>
    %c0_6 = arith.constant 0 : index
    %c0_7 = arith.constant 0 : index
    %9 = vector.load %arg3[%c0_6, %c0_7] : memref<256x256xbf16, #tpu.memory_space<vmem>>, vector<256x256xbf16>
    %10 = arith.truncf %8 : vector<8x256xf32> to vector<8x256xbf16>
    %cst_8 = arith.constant dense<0.000000e+00> : vector<8x256xf32>
    %11 = tpu.matmul %10, %9, %cst_8 {dimension_numbers = #tpu.dot_dimension_numbers<[1], [0], [0], [1], [0, 0, 1, 1], [], []>} : vector<8x256xbf16>, vector<256x256xbf16>, vector<8x256xf32> -> vector<8x256xf32>
    %c0_9 = arith.constant 0 : index
    %c0_10 = arith.constant 0 : index
    %12 = vector.load %arg4[%c0_9, %c0_10] : memref<1x256xf32, #tpu.memory_space<vmem>>, vector<1x256xf32>
    %13 = vector.broadcast %12 : vector<1x256xf32> to vector<8x256xf32>
    %14 = arith.addf %11, %13 : vector<8x256xf32>
    %15 = vector.extract_strided_slice %14 {offsets = [0, 128], sizes = [8, 4], strides = [1, 1]} : vector<8x256xf32> to vector<8x4xf32>
    %cst_11 = arith.constant dense<0xFF800000> : vector<8xf32>
    %16 = vector.multi_reduction <maximumf>, %15, %cst_11 [1] : vector<8x4xf32> to vector<8xf32>
    %17 = vector.shape_cast %16 : vector<8xf32> to vector<8x1xf32>
    %18 = vector.broadcast %17 : vector<8x1xf32> to vector<8x4xf32>
    %19 = arith.subf %15, %18 : vector<8x4xf32>
    %20 = math.exp %19 : vector<8x4xf32>
    %cst_12 = arith.constant dense<0.000000e+00> : vector<8xf32>
    %21 = vector.multi_reduction <add>, %20, %cst_12 [1] : vector<8x4xf32> to vector<8xf32>
    %22 = vector.shape_cast %21 : vector<8xf32> to vector<8x1xf32>
    %23 = tpu.reciprocal %22 {approx = true} : vector<8x1xf32> -> vector<8x1xf32>
    %24 = vector.broadcast %23 : vector<8x1xf32> to vector<8x4xf32>
    %25 = arith.mulf %20, %24 : vector<8x4xf32>
    %26 = vector.extract_strided_slice %14 {offsets = [0, 0], sizes = [8, 128], strides = [1, 1]} : vector<8x256xf32> to vector<8x128xf32>
    %27 = vector.extract_strided_slice %14 {offsets = [0, 132], sizes = [8, 124], strides = [1, 1]} : vector<8x256xf32> to vector<8x124xf32>
    %28 = tpu.concatenate %26, %25, %27 in 1 : vector<8x128xf32>, vector<8x4xf32>, vector<8x124xf32> -> vector<8x256xf32>
    %c0_13 = arith.constant 0 : index
    %c0_14 = arith.constant 0 : index
    %29 = vector.load %arg13[%c0_13, %c0_14] : memref<8x256xf32, #tpu.memory_space<vmem>>, vector<8x256xf32>
    tpu.vector_store %arg13[%c0_13, %c0_14], %28 {strides = array<i32>} : memref<8x256xf32, #tpu.memory_space<vmem>>, vector<8x256xf32>,
    %30 = vector.extract_strided_slice %14 {offsets = [0, 0], sizes = [8, 32], strides = [1, 1]} : vector<8x256xf32> to vector<8x32xf32>
    %31 = vector.extract_strided_slice %14 {offsets = [0, 64], sizes = [8, 32], strides = [1, 1]} : vector<8x256xf32> to vector<8x32xf32>
    %c0_15 = arith.constant 0 : index
    %c0_16 = arith.constant 0 : index
    %32 = vector.load %arg5[%c0_15, %c0_16] : memref<32x16xbf16, #tpu.memory_space<vmem>>, vector<32x16xbf16>
    %33 = arith.truncf %31 : vector<8x32xf32> to vector<8x32xbf16>
    %cst_17 = arith.constant dense<0.000000e+00> : vector<8x16xf32>
    %34 = tpu.matmul %33, %32, %cst_17 {dimension_numbers = #tpu.dot_dimension_numbers<[1], [0], [0], [1], [0, 0, 1, 1], [], []>} : vector<8x32xbf16>, vector<32x16xbf16>, vector<8x16xf32> -> vector<8x16xf32>
    %c0_18 = arith.constant 0 : index
    %c0_19 = arith.constant 0 : index
    %35 = vector.load %arg6[%c0_18, %c0_19] : memref<1x16xf32, #tpu.memory_space<vmem>>, vector<1x16xf32>
    %36 = vector.broadcast %35 : vector<1x16xf32> to vector<8x16xf32>
    %37 = arith.addf %34, %36 : vector<8x16xf32>
    %38 = math.tanh %37 : vector<8x16xf32>
    %c0_20 = arith.constant 0 : index
    %c0_21 = arith.constant 0 : index
    %39 = vector.load %arg7[%c0_20, %c0_21] : memref<16x256xbf16, #tpu.memory_space<vmem>>, vector<16x256xbf16>
    %40 = arith.truncf %38 : vector<8x16xf32> to vector<8x16xbf16>
    %cst_22 = arith.constant dense<0.000000e+00> : vector<8x256xf32>
    %41 = tpu.matmul %40, %39, %cst_22 {dimension_numbers = #tpu.dot_dimension_numbers<[1], [0], [0], [1], [0, 0, 1, 1], [], []>} : vector<8x16xbf16>, vector<16x256xbf16>, vector<8x256xf32> -> vector<8x256xf32>
    %c0_23 = arith.constant 0 : index
    %c0_24 = arith.constant 0 : index
    %42 = vector.load %arg8[%c0_23, %c0_24] : memref<1x256xf32, #tpu.memory_space<vmem>>, vector<1x256xf32>
    %43 = vector.broadcast %42 : vector<1x256xf32> to vector<8x256xf32>
    %44 = arith.addf %41, %43 : vector<8x256xf32>
    %c0_25 = arith.constant 0 : index
    %c0_26 = arith.constant 0 : index
    %45 = vector.load %arg14[%c0_25, %c0_26] : memref<8x256xf32, #tpu.memory_space<vmem>>, vector<8x256xf32>
    tpu.vector_store %arg14[%c0_25, %c0_26], %44 {strides = array<i32>} : memref<8x256xf32, #tpu.memory_space<vmem>>, vector<8x256xf32>,
    %c0_27 = arith.constant 0 : index
    %c0_28 = arith.constant 0 : index
    %46 = vector.load %arg9[%c0_27, %c0_28] : memref<32x256xbf16, #tpu.memory_space<vmem>>, vector<32x256xbf16>
    %47 = arith.truncf %30 : vector<8x32xf32> to vector<8x32xbf16>
    %cst_29 = arith.constant dense<0.000000e+00> : vector<8x256xf32>
    %48 = tpu.matmul %47, %46, %cst_29 {dimension_numbers = #tpu.dot_dimension_numbers<[1], [0], [0], [1], [0, 0, 1, 1], [], []>} : vector<8x32xbf16>, vector<32x256xbf16>, vector<8x256xf32> -> vector<8x256xf32>
    %c0_30 = arith.constant 0 : index
    %c0_31 = arith.constant 0 : index
    %49 = vector.load %arg10[%c0_30, %c0_31] : memref<1x256xf32, #tpu.memory_space<vmem>>, vector<1x256xf32>
    %50 = vector.broadcast %49 : vector<1x256xf32> to vector<8x256xf32>
    %51 = arith.addf %48, %50 : vector<8x256xf32>
    %cst_32 = arith.constant 0.000000e+00 : f32
    %52 = vector.broadcast %cst_32 : f32 to vector<8x256xf32>
    %53 = arith.maximumf %51, %52 : vector<8x256xf32>
    %c0_33 = arith.constant 0 : index
    %c0_34 = arith.constant 0 : index
    %54 = vector.load %arg11[%c0_33, %c0_34] : memref<256x1024xbf16, #tpu.memory_space<vmem>>, vector<256x1024xbf16>
    %55 = arith.truncf %53 : vector<8x256xf32> to vector<8x256xbf16>
    %cst_35 = arith.constant dense<0.000000e+00> : vector<8x1024xf32>
    %56 = tpu.matmul %55, %54, %cst_35 {dimension_numbers = #tpu.dot_dimension_numbers<[1], [0], [0], [1], [0, 0, 1, 1], [], []>} : vector<8x256xbf16>, vector<256x1024xbf16>, vector<8x1024xf32> -> vector<8x1024xf32>
    %c0_36 = arith.constant 0 : index
    %c0_37 = arith.constant 0 : index
    %57 = vector.load %arg12[%c0_36, %c0_37] : memref<1x1024xf32, #tpu.memory_space<vmem>>, vector<1x1024xf32>
    %58 = vector.broadcast %57 : vector<1x1024xf32> to vector<8x1024xf32>
    %59 = arith.addf %56, %58 : vector<8x1024xf32>
    %c0_38 = arith.constant 0 : index
    %c0_39 = arith.constant 0 : index
    %60 = vector.load %arg15[%c0_38, %c0_39] : memref<8x1024xf32, #tpu.memory_space<vmem>>, vector<8x1024xf32>
    tpu.vector_store %arg15[%c0_38, %c0_39], %59 {strides = array<i32>} : memref<8x1024xf32, #tpu.memory_space<vmem>>, vector<8x1024xf32>,
    return
  }
}

</mosaic_0001>

<bundles_post_ra>
// kernel: tvsum_gist_forward.1
= control target key start
LH: loop header
LB: loop body
LE: loop exit
PB: predicated region body
PF: predicated region fallthrough
CT: control target
= control target key end

     0   :  { %vm2439_vm0 = vmmov 0   ;;  %vm783_vm1 = vcmask 31744   ;;  %vm825_vm2 = vcmask 261120   ;;  %vm895_vm3 = vcmask 130048   ;;  %s3334_s1 = inlined_call_operand.vmem [shape: bf16[512,256], index: 1, kind: input, shape index: {}]   ;;  %s3335_s0 = inlined_call_operand.vmem [shape: f32[8,512], index: 0, kind: input, shape index: {}]   ;;  %s3336_s3 = inlined_call_operand.vmem [shape: bf16[256,256], index: 3, kind: input, shape index: {}]   ;;  %s3337_s2 = inlined_call_operand.vmem [shape: f32[1,256], index: 2, kind: input, shape index: {}]   ;;  %s3338_s5 = inlined_call_operand.vmem [shape: bf16[32,16], index: 5, kind: input, shape index: {}]   ;;  %s3339_s4 = inlined_call_operand.vmem [shape: f32[1,256], index: 4, kind: input, shape index: {}]   ;;  %s3340_s13 = inlined_call_operand.vmem [shape: f32[8,256], index: 13, kind: output, shape index: {0}]   ;;  %s3341_s7 = inlined_call_operand.vmem [shape: bf16[16,256], index: 7, kind: input, shape index: {}]   ;;  %s3342_s9 = inlined_call_operand.vmem [shape: bf16[32,256], index: 9, kind: input, shape index: {}]   ;;  %s3343_s11 = inlined_call_operand.vmem [shape: bf16[256,1024], index: 11, kind: input, shape index: {}]   ;;  %s3344_s6 = inlined_call_operand.vmem [shape: f32[1,16], index: 6, kind: input, shape index: {}]   ;;  %s3345_s8 = inlined_call_operand.vmem [shape: f32[1,256], index: 8, kind: input, shape index: {}]   ;;  %s3346_s10 = inlined_call_operand.vmem [shape: f32[1,256], index: 10, kind: input, shape index: {}]   ;;  %s3347_s14 = inlined_call_operand.vmem [shape: f32[8,256], index: 14, kind: output, shape index: {1}]   ;;  %s3348_s12 = inlined_call_operand.vmem [shape: f32[1,1024], index: 12, kind: input, shape index: {}]   ;;  %s3349_s15 = inlined_call_operand.vmem [shape: f32[8,1024], index: 15, kind: output, shape index: {2}]  }
   0x1   :  { %v2277_v0 = vld [vmem:[%s3334_s1 + $0x4] ss:$8 sps:$4 sm:$0xff]   ;;  %v2279_v1 = vld [vmem:[%s3334_s1] ss:$8 sps:$4 sm:$0xff]   ;;  %v2280_v2 = vld [vmem:[%s3334_s1 + $0x14] ss:$8 sps:$4 sm:$0xff]  }
   0x2   :  { %452 = vmatprep.subr.bf16.mxu0 %v2277_v0  ;;  %v2282_v3 = vld [vmem:[%s3334_s1 + $0x10] ss:$8 sps:$4 sm:$0xff]   ;;  %v2283_v4 = vld [vmem:[%s3334_s1 + $0x24] ss:$8 sps:$4 sm:$0xff]   ;;  %v2285_v5 = vld [vmem:[%s3334_s1 + $0x20] ss:$8 sps:$4 sm:$0xff]  }
   0x3   :  { %453 = vmatpush1.bf16.msra.mxu0 %v2279_v1  ;;  %v2286_v6 = vld [vmem:[%s3334_s1 + $0x34] ss:$8 sps:$4 sm:$0xff]   ;;  %v2288_v7 = vld [vmem:[%s3334_s1 + $0x30] ss:$8 sps:$4 sm:$0xff]   ;;  %v2289_v8 = vld [vmem:[%s3334_s1 + $0x44] ss:$8 sps:$4 sm:$0xff]  }
   0x4   :  { %454 = vmatprep.subr.bf16.mxu0 %v2280_v2  ;;  %v2291_v9 = vld [vmem:[%s3334_s1 + $0x40] ss:$8 sps:$4 sm:$0xff]   ;;  %v2292_v10 = vld [vmem:[%s3334_s1 + $0x54] ss:$8 sps:$4 sm:$0xff]   ;;  %v2294_v11 = vld [vmem:[%s3334_s1 + $0x50] ss:$8 sps:$4 sm:$0xff]  }
   0x5   :  { %v2295_v12 = vld [vmem:[%s3334_s1 + $0x64] ss:$8 sps:$4 sm:$0xff]   ;;  %v2297_v15 = vld [vmem:[%s3334_s1 + $0x60] ss:$8 sps:$4 sm:$0xff]   ;;  %v2298_v16 = vld [vmem:[%s3334_s1 + $0x74] ss:$8 sps:$4 sm:$0xff]  }
   0x6   :  { %v49_v13 = vld [vmem:[%s3335_s0 + $0x8] sm:$0xff]  ;;  %v2300_v17 = vld [vmem:[%s3334_s1 + $0x70] ss:$8 sps:$4 sm:$0xff]   ;;  %v2304_v20 = vld [vmem:[%s3334_s1 + $0x94] ss:$8 sps:$4 sm:$0xff]  }
   0x7   :  { %455 = vmatpush1.bf16.msra.mxu0 %v2282_v3  ;;  %v117_v14 = vpack.c.bf16 %v49_v13, %v49_v13  ;;  %v2301_v18 = vld [vmem:[%s3334_s1 + $0x84] ss:$8 sps:$4 sm:$0xff]   ;;  %v2303_v19 = vld [vmem:[%s3334_s1 + $0x80] ss:$8 sps:$4 sm:$0xff]   ;;  %v2306_v21 = vld [vmem:[%s3334_s1 + $0x90] ss:$8 sps:$4 sm:$0xff]  }
   0x8   :  { %456 = vmatprep.subr.bf16.mxu0 %v2283_v4  ;;  %v2307_v22 = vld [vmem:[%s3334_s1 + $0xa4] ss:$8 sps:$4 sm:$0xff]   ;;  %v2309_v23 = vld [vmem:[%s3334_s1 + $0xa0] ss:$8 sps:$4 sm:$0xff]   ;;  %v2310_v24 = vld [vmem:[%s3334_s1 + $0xb4] ss:$8 sps:$4 sm:$0xff]  }
   0x9   :  { %484 = vmatprep.mubr.bf16.mxu0 %v117_v14  ;;  %v2312_v25 = vld [vmem:[%s3334_s1 + $0xb0] ss:$8 sps:$4 sm:$0xff]   ;;  %v2313_v26 = vld [vmem:[%s3334_s1 + $0xc4] ss:$8 sps:$4 sm:$0xff]   ;;  %v2375_v28 = vld [vmem:[%s3336_s3] ss:$8 sps:$4 sm:$0xff]  }
   0xa   :  { %v2373_v27 = vld [vmem:[%s3336_s3 + $0x4] ss:$8 sps:$4 sm:$0xff]   ;;  %v2315_v29 = vld [vmem:[%s3334_s1 + $0xc0] ss:$8 sps:$4 sm:$0xff]   ;;  %v2376_v30 = vld [vmem:[%s3336_s3 + $0x14] ss:$8 sps:$4 sm:$0xff]  }
   0xb   :  { %457 = vmatpush1.bf16.msra.mxu0 %v2285_v5  ;;  %742 = vmatprep.subr.bf16.mxu1 %v2373_v27  ;;  %v2316_v31 = vld [vmem:[%s3334_s1 + $0xd4] ss:$8 sps:$4 sm:$0xff]   ;;  %v2378_v32 = vld [vmem:[%s3336_s3 + $0x10] ss:$8 sps:$4 sm:$0xff]   ;;  %v2379_v33 = vld [vmem:[%s3336_s3 + $0x24] ss:$8 sps:$4 sm:$0xff]  }
   0xc   :  { %458 = vmatprep.subr.bf16.mxu0 %v2286_v6  ;;  %743 = vmatpush1.bf16.msra.mxu1 %v2375_v28  ;;  %v2318_v34 = vld [vmem:[%s3334_s1 + $0xd0] ss:$8 sps:$4 sm:$0xff]   ;;  %v2319_v35 = vld [vmem:[%s3334_s1 + $0xe4] ss:$8 sps:$4 sm:$0xff]   ;;  %v2381_v36 = vld [vmem:[%s3336_s3 + $0x20] ss:$8 sps:$4 sm:$0xff]  }
   0xd   :  { %744 = vmatprep.subr.bf16.mxu1 %v2376_v30  ;;  %v2382_v37 = vld [vmem:[%s3336_s3 + $0x34] ss:$8 sps:$4 sm:$0xff]   ;;  %v2321_v38 = vld [vmem:[%s3334_s1 + $0xe0] ss:$8 sps:$4 sm:$0xff]   ;;  %v2384_v40 = vld [vmem:[%s3336_s3 + $0x30] ss:$8 sps:$4 sm:$0xff]  }
   0xe   :  { %v2322_v39 = vld [vmem:[%s3334_s1 + $0xf4] ss:$8 sps:$4 sm:$0xff]   ;;  %v2385_v41 = vld [vmem:[%s3336_s3 + $0x44] ss:$8 sps:$4 sm:$0xff]   ;;  %v2324_v42 = vld [vmem:[%s3334_s1 + $0xf0] ss:$8 sps:$4 sm:$0xff]  }
   0xf   :  { %459 = vmatpush1.bf16.msra.mxu0 %v2288_v7  ;;  %v2327_v43 = vld [vmem:[%s3334_s1 + $0x104] ss:$8 sps:$4 sm:$0xff]   ;;  %v51_v45 = vld [vmem:[%s3335_s0 + $0x18] sm:$0xff]  ;;  %v2387_v46 = vld [vmem:[%s3336_s3 + $0x40] ss:$8 sps:$4 sm:$0xff]  }
  0x10   :  { %460 = vmatprep.subr.bf16.mxu0 %v2289_v8  ;;  %745 = vmatpush1.bf16.msra.mxu1 %v2378_v32  ;;  %v48_v44 = vld [vmem:[%s3335_s0] sm:$0xff]  ;;  %v2388_v47 = vld [vmem:[%s3336_s3 + $0x54] ss:$8 sps:$4 sm:$0xff]   ;;  %v119_v50 = vpack.c.bf16 %v51_v45, %v51_v45  ;;  %v2390_v52 = vld [vmem:[%s3336_s3 + $0x50] ss:$8 sps:$4 sm:$0xff]  }
  0x11   :  { %746 = vmatprep.subr.bf16.mxu1 %v2379_v33  ;;  %v2325_v48 = vld [vmem:[%s3334_s1 + $0x100] ss:$8 sps:$4 sm:$0xff]   ;;  %v116_v49 = vpack.c.bf16 %v48_v44, %v48_v44  ;;  %v2330_v51 = vld [vmem:[%s3334_s1 + $0x114] ss:$8 sps:$4 sm:$0xff]   ;;  %v2391_v53 = vld [vmem:[%s3336_s3 + $0x64] ss:$8 sps:$4 sm:$0xff]  }
  0x12   :  { %v2328_v54 = vld [vmem:[%s3334_s1 + $0x110] ss:$8 sps:$4 sm:$0xff]   ;;  %v2333_v55 = vld [vmem:[%s3334_s1 + $0x124] ss:$8 sps:$4 sm:$0xff]   ;;  %v2393_v56 = vld [vmem:[%s3336_s3 + $0x60] ss:$8 sps:$4 sm:$0xff]  }
  0x13   :  { %461 = vmatpush1.bf16.msra.mxu0 %v2291_v9  ;;  %v2394_v57 = vld [vmem:[%s3336_s3 + $0x74] ss:$8 sps:$4 sm:$0xff]   ;;  %v2331_v58 = vld [vmem:[%s3334_s1 + $0x120] ss:$8 sps:$4 sm:$0xff]   ;;  %v2396_v60 = vld [vmem:[%s3336_s3 + $0x70] ss:$8 sps:$4 sm:$0xff]  }
  0x14   :  { %462 = vmatprep.subr.bf16.mxu0 %v2292_v10  ;;  %747 = vmatpush1.bf16.msra.mxu1 %v2381_v36  ;;  %v2336_v59 = vld [vmem:[%s3334_s1 + $0x134] ss:$8 sps:$4 sm:$0xff]   ;;  %v2397_v61 = vld [vmem:[%s3336_s3 + $0x84] ss:$8 sps:$4 sm:$0xff]   ;;  %v2334_v62 = vld [vmem:[%s3334_s1 + $0x130] ss:$8 sps:$4 sm:$0xff]  }
  0x15   :  { %748 = vmatprep.subr.bf16.mxu1 %v2382_v37  ;;  %v2339_v63 = vld [vmem:[%s3334_s1 + $0x144] ss:$8 sps:$4 sm:$0xff]   ;;  %v2399_v0 = vld [vmem:[%s3336_s3 + $0x80] ss:$8 sps:$4 sm:$0xff]   ;;  %v2400_v1 = vld [vmem:[%s3336_s3 + $0x94] ss:$8 sps:$4 sm:$0xff]  }
  0x16   :  { %v2337_v2 = vld [vmem:[%s3334_s1 + $0x140] ss:$8 sps:$4 sm:$0xff]   ;;  %v2342_v3 = vld [vmem:[%s3334_s1 + $0x154] ss:$8 sps:$4 sm:$0xff]   ;;  %v2402_v4 = vld [vmem:[%s3336_s3 + $0x90] ss:$8 sps:$4 sm:$0xff]  }
  0x17   :  { %463 = vmatpush1.bf16.msra.mxu0 %v2294_v11  ;;  %v2403_v5 = vld [vmem:[%s3336_s3 + $0xa4] ss:$8 sps:$4 sm:$0xff]   ;;  %v2340_v6 = vld [vmem:[%s3334_s1 + $0x150] ss:$8 sps:$4 sm:$0xff]   ;;  %v2405_v8 = vld [vmem:[%s3336_s3 + $0xa0] ss:$8 sps:$4 sm:$0xff]  }
  0x18   :  { %464 = vmatprep.subr.bf16.mxu0 %v2295_v12  ;;  %749 = vmatpush1.bf16.msra.mxu1 %v2384_v40  ;;  %v2345_v7 = vld [vmem:[%s3334_s1 + $0x164] ss:$8 sps:$4 sm:$0xff]   ;;  %v2406_v9 = vld [vmem:[%s3336_s3 + $0xb4] ss:$8 sps:$4 sm:$0xff]   ;;  %v2343_v10 = vld [vmem:[%s3334_s1 + $0x160] ss:$8 sps:$4 sm:$0xff]   ;;  %v122_v40 = vlaneseq }
  0x19   :  { %750 = vmatprep.subr.bf16.mxu1 %v2385_v41  ;;  %v2348_v11 = vld [vmem:[%s3334_s1 + $0x174] ss:$8 sps:$4 sm:$0xff]   ;;  %v2408_v12 = vld [vmem:[%s3336_s3 + $0xb0] ss:$8 sps:$4 sm:$0xff]   ;;  %v2409_v13 = vld [vmem:[%s3336_s3 + $0xc4] ss:$8 sps:$4 sm:$0xff]  }
  0x1a   :  { %v2346_v14 = vld [vmem:[%s3334_s1 + $0x170] ss:$8 sps:$4 sm:$0xff]   ;;  %v2361_v27 = vld [vmem:[%s3334_s1 + $0x1c0] ss:$8 sps:$4 sm:$0xff]   ;;  %v2366_v28 = vld [vmem:[%s3334_s1 + $0x1d4] ss:$8 sps:$4 sm:$0xff]  }
  0x1b   :  { %465 = vmatpush1.bf16.msra.mxu0 %v2297_v15  ;;  %v2351_v15 = vld [vmem:[%s3334_s1 + $0x184] ss:$8 sps:$4 sm:$0xff]   ;;  %v2372_v32 = vld [vmem:[%s3334_s1 + $0x1f4] ss:$8 sps:$4 sm:$0xff]   ;;  %v2370_v33 = vld [vmem:[%s3334_s1 + $0x1f0] ss:$8 sps:$4 sm:$0xff]  }
  0x1c   :  { %466 = vmatprep.subr.bf16.mxu0 %v2298_v16  ;;  %751 = vmatpush1.bf16.msra.mxu1 %v2387_v46  ;;  %v2411_v16 = vld [vmem:[%s3336_s3 + $0xc0] ss:$8 sps:$4 sm:$0xff]   ;;  %v2369_v30 = vld [vmem:[%s3334_s1 + $0x1e4] ss:$8 sps:$4 sm:$0xff]   ;;  %v2822_v41 = vshrl.u32 %v122_v40, 7 }
  0x1d   :  { %752 = vmatprep.subr.bf16.mxu1 %v2388_v47  ;;  %v2415_v36 = vld [vmem:[%s3336_s3 + $0xe4] ss:$8 sps:$4 sm:$0xff]   ;;  %v2417_v37 = vld [vmem:[%s3336_s3 + $0xe0] ss:$8 sps:$4 sm:$0xff]  }
  0x1e   :  { %v2831_v44 = vsub.s32 1, %v2822_v41 }
  0x1f   :  { %467 = vmatpush1.bf16.msra.mxu0 %v2300_v17  ;;  %v2412_v17 = vld [vmem:[%s3336_s3 + $0xd4] ss:$8 sps:$4 sm:$0xff]  }
  0x20   :  { %468 = vmatprep.subr.bf16.mxu0 %v2301_v18  ;;  %753 = vmatpush1.bf16.msra.mxu1 %v2390_v52  ;;  %v2349_v18 = vld [vmem:[%s3334_s1 + $0x180] ss:$8 sps:$4 sm:$0xff]  }
  0x21   :  { %754 = vmatprep.subr.bf16.mxu1 %v2391_v53 }
  0x23   :  { %469 = vmatpush1.bf16.msra.mxu0 %v2303_v19  ;;  %v2354_v19 = vld [vmem:[%s3334_s1 + $0x194] ss:$8 sps:$4 sm:$0xff]  }
  0x24   :  { %470 = vmatprep.subr.bf16.mxu0 %v2304_v20  ;;  %755 = vmatpush1.bf16.msra.mxu1 %v2393_v56  ;;  %v2414_v20 = vld [vmem:[%s3336_s3 + $0xd0] ss:$8 sps:$4 sm:$0xff]  }
  0x25   :  { %756 = vmatprep.subr.bf16.mxu1 %v2394_v57  ;;  %v2438_v57 = vmov 0.0  }
  0x27   :  { %471 = vmatpush1.bf16.msra.mxu0 %v2306_v21  ;;  %v2352_v21 = vld [vmem:[%s3334_s1 + $0x190] ss:$8 sps:$4 sm:$0xff]  }
  0x28   :  { %472 = vmatprep.subr.bf16.mxu0 %v2307_v22  ;;  %757 = vmatpush1.bf16.msra.mxu1 %v2396_v60  ;;  %v2357_v22 = vld [vmem:[%s3334_s1 + $0x1a4] ss:$8 sps:$4 sm:$0xff]   ;;  %v570_v60 = vld [vmem:[%s3339_s4] sm:$0x3] }
  0x29   :  { %758 = vmatprep.subr.bf16.mxu1 %v2397_v61 }
  0x2b   :  { %473 = vmatpush1.bf16.msra.mxu0 %v2309_v23  ;;  %v2355_v23 = vld [vmem:[%s3334_s1 + $0x1a0] ss:$8 sps:$4 sm:$0xff]  }
  0x2c   :  { %474 = vmatprep.subr.bf16.mxu0 %v2310_v24  ;;  %759 = vmatpush1.bf16.msra.mxu1 %v2399_v0  ;;  %v2360_v24 = vld [vmem:[%s3334_s1 + $0x1b4] ss:$8 sps:$4 sm:$0xff]  }
  0x2d   :  { %760 = vmatprep.subr.bf16.mxu1 %v2400_v1 }
  0x2f   :  { %475 = vmatpush1.bf16.msra.mxu0 %v2312_v25  ;;  %v2358_v25 = vld [vmem:[%s3334_s1 + $0x1b0] ss:$8 sps:$4 sm:$0xff]  }
  0x30   :  { %476 = vmatprep.subr.bf16.mxu0 %v2313_v26  ;;  %761 = vmatpush1.bf16.msra.mxu1 %v2402_v4  ;;  %v2363_v26 = vld [vmem:[%s3334_s1 + $0x1c4] ss:$8 sps:$4 sm:$0xff]   ;;  %v579_v4 = vrot.slane %v570_v60, %v2831_v44 }
  0x31   :  { %762 = vmatprep.subr.bf16.mxu1 %v2403_v5 }
  0x33   :  { %477 = vmatpush1.bf16.msra.mxu0 %v2315_v29  ;;  %v2364_v29 = vld [vmem:[%s3334_s1 + $0x1d0] ss:$8 sps:$4 sm:$0xff]  }
  0x34   :  { %478 = vmatprep.subr.bf16.mxu0 %v2316_v31  ;;  %763 = vmatpush1.bf16.msra.mxu1 %v2405_v8  ;;  %v2367_v31 = vld [vmem:[%s3334_s1 + $0x1e0] ss:$8 sps:$4 sm:$0xff]  }
  0x35   :  { %764 = vmatprep.subr.bf16.mxu1 %v2406_v9 }
  0x37   :  { %479 = vmatpush1.bf16.msra.mxu0 %v2318_v34  ;;  %v50_v34 = vld [vmem:[%s3335_s0 + $0x10] sm:$0xff] }
  0x38   :  { %480 = vmatprep.subr.bf16.mxu0 %v2319_v35  ;;  %765 = vmatpush1.bf16.msra.mxu1 %v2408_v12  ;;  %v118_v35 = vpack.c.bf16 %v50_v34, %v50_v34  ;;  %v1061_v34 = vld [vmem:[%s3343_s11 + $0x128] sm:$0xff] }
  0x39   :  { %766 = vmatprep.subr.bf16.mxu1 %v2409_v13  ;;  %v2425_v13 = vld [vmem:[%s3341_s7 + $0x4] ss:$8 sps:$4 sm:$0xff]  }
  0x3b   :  { %481 = vmatpush1.bf16.msra.mxu0 %v2321_v38  ;;  %v2418_v38 = vld [vmem:[%s3336_s3 + $0xf4] ss:$8 sps:$4 sm:$0xff]  }
  0x3c   :  { %482 = vmatprep.subr.bf16.mxu0 %v2322_v39  ;;  %767 = vmatpush1.bf16.msra.mxu1 %v2411_v16  ;;  %v2420_v39 = vld [vmem:[%s3336_s3 + $0xf0] ss:$8 sps:$4 sm:$0xff]   ;;  %v2441_v16 = vmov 0  }
  0x3d   :  { %768 = vmatprep.subr.bf16.mxu1 %v2412_v17  ;;  %v1025_v17 = vld [vmem:[%s3343_s11 + $0x8] sm:$0xff] }
  0x3f   :  { %483 = vmatpush1.bf16.msra.mxu0 %v2324_v42  ;;  %v2825_v42 = vsub.s32 0, %v2822_v41 }
  0x40   :  { %493 = vmatprep.subr.bf16.mxu0 %v2327_v43  ;;  %769 = vmatpush1.bf16.msra.mxu1 %v2414_v20  ;;  %v120_v43 = vld [vmem:[%s3337_s2] sm:$0x3] }
  0x41   :  { %770 = vmatprep.subr.bf16.mxu1 %v2415_v36  ;;  %v125_v45 = vrot.slane %v120_v43, %v2825_v42  ;;  %v129_v46 = vrot.slane %v120_v43, %v2831_v44  ;;  %v575_v61 = vrot.slane %v570_v60, %v2825_v42  ;;  %v1073_v43 = vld [vmem:[%s3343_s11 + $0x188] sm:$0xff] }
  0x42   :  { %485 = vmatmul.mubr.bf16.vlgmr.msra.gmra.mrb[0].mxu0 %v116_v49  ;;  %v1105_v60 = vld [vmem:[%s3343_s11 + $0x288] sm:$0xff] }
  0x43   :  { %494 = vmatpush1.bf16.msra.mxu0 %v2325_v48  ;;  %525 = vmatprep.mubr.bf16.mxu0 %v119_v50 }
  0x44   :  { %495 = vmatprep.subr.bf16.mxu0 %v2330_v51  ;;  %771 = vmatpush1.bf16.msra.mxu1 %v2417_v37  ;;  %v1065_v37 = vld [vmem:[%s3343_s11 + $0x148] sm:$0xff] }
  0x45   :  { %772 = vmatprep.subr.bf16.mxu1 %v2418_v38  ;;  %v1069_v38 = vld [vmem:[%s3343_s11 + $0x168] sm:$0xff] }
  0x46   :  { %v2170_v40 = vcombine.low %v1065_v37, %v1069_v38 }
  0x47   :  { %496 = vmatpush1.bf16.msra.mxu0 %v2328_v54 }
  0x48   :  { %497 = vmatprep.subr.bf16.mxu0 %v2333_v55  ;;  %773 = vmatpush1.bf16.msra.mxu1 %v2420_v39  ;;  %v2171_v39 = vcombine.high %v1065_v37, %v1069_v38  ;;  %v1064_v38 = vld [vmem:[%s3343_s11 + $0x140] sm:$0xff] }
  0x49   :  { %2259 = vmatprep.subr.bf16.mxu1 %v2438_v57 }
  0x4b   :  { %498 = vmatpush1.bf16.msra.mxu0 %v2331_v58  ;;  %v2421_v58 = vld [vmem:[%s3338_s5] sm:$0xff]  }
  0x4c   :  { %499 = vmatprep.subr.bf16.mxu0 %v2336_v59  ;;  %v2422_v59 = vld [vmem:[%s3338_s5 + $0x8] sm:$0xff]   ;;  %s2440_s5 = smov 64  }
  0x4f   :  { %500 = vmatpush1.bf16.msra.mxu0 %v2334_v62 }
  0x50   :  { %501 = vmatprep.subr.bf16.mxu0 %v2339_v63 }
  0x53   :  { %502 = vmatpush1.bf16.msra.mxu0 %v2337_v2 }
  0x54   :  { %503 = vmatprep.subr.bf16.mxu0 %v2342_v3 }
  0x57   :  { %504 = vmatpush1.bf16.msra.mxu0 %v2340_v6 }
  0x58   :  { %505 = vmatprep.subr.bf16.mxu0 %v2345_v7 }
  0x5b   :  { %506 = vmatpush1.bf16.msra.mxu0 %v2343_v10 }
  0x5c   :  { %507 = vmatprep.subr.bf16.mxu0 %v2348_v11 }
  0x5f   :  { %508 = vmatpush1.bf16.msra.mxu0 %v2346_v14  ;;  %v2423_v14 = vld [vmem:[%s3341_s7] ss:$8 sps:$4 sm:$0xff]  }
  0x60   :  { %509 = vmatprep.subr.bf16.mxu0 %v2351_v15  ;;  %v2428_v15 = vld [vmem:[%s3342_s9 + $0x4] ss:$8 sps:$4 sm:$0xff]  }
  0x63   :  { %510 = vmatpush1.bf16.msra.mxu0 %v2349_v18  ;;  %v1029_v18 = vld [vmem:[%s3343_s11 + $0x28] sm:$0xff] }
  0x64   :  { %511 = vmatprep.subr.bf16.mxu0 %v2354_v19  ;;  %v2130_v19 = vcombine.low %v1025_v17, %v1029_v18  ;;  %v2131_v20 = vcombine.high %v1025_v17, %v1029_v18  ;;  %v2431_v18 = vld [vmem:[%s3342_s9 + $0x14] ss:$8 sps:$4 sm:$0xff]  }
  0x67   :  { %512 = vmatpush1.bf16.msra.mxu0 %v2352_v21  ;;  %v1033_v21 = vld [vmem:[%s3343_s11 + $0x48] sm:$0xff] }
  0x68   :  { %513 = vmatprep.subr.bf16.mxu0 %v2357_v22  ;;  %v1037_v22 = vld [vmem:[%s3343_s11 + $0x68] sm:$0xff] }
  0x6b   :  { %514 = vmatpush1.bf16.msra.mxu0 %v2355_v23  ;;  %v2139_v23 = vcombine.high %v1033_v21, %v1037_v22 }
  0x6c   :  { %515 = vmatprep.subr.bf16.mxu0 %v2360_v24  ;;  %v2138_v24 = vcombine.low %v1033_v21, %v1037_v22  ;;  %v1028_v21 = vld [vmem:[%s3343_s11 + $0x20] sm:$0xff] }
  0x6f   :  { %516 = vmatpush1.bf16.msra.mxu0 %v2358_v25  ;;  %v1041_v25 = vld [vmem:[%s3343_s11 + $0x88] sm:$0xff] }
  0x70   :  { %517 = vmatprep.subr.bf16.mxu0 %v2363_v26  ;;  %v1045_v26 = vld [vmem:[%s3343_s11 + $0xa8] sm:$0xff] }
  0x73   :  { %518 = vmatpush1.bf16.msra.mxu0 %v2361_v27  ;;  %v2147_v27 = vcombine.high %v1041_v25, %v1045_v26 }
  0x74   :  { %519 = vmatprep.subr.bf16.mxu0 %v2366_v28  ;;  %v2146_v28 = vcombine.low %v1041_v25, %v1045_v26  ;;  %v1036_v26 = vld [vmem:[%s3343_s11 + $0x60] sm:$0xff] }
  0x77   :  { %520 = vmatpush1.bf16.msra.mxu0 %v2364_v29  ;;  %v1049_v29 = vld [vmem:[%s3343_s11 + $0xc8] sm:$0xff] }
  0x78   :  { %521 = vmatprep.subr.bf16.mxu0 %v2369_v30  ;;  %v1053_v30 = vld [vmem:[%s3343_s11 + $0xe8] sm:$0xff] }
  0x7b   :  { %522 = vmatpush1.bf16.msra.mxu0 %v2367_v31  ;;  %v2155_v31 = vcombine.high %v1049_v29, %v1053_v30 }
  0x7c   :  { %523 = vmatprep.subr.bf16.mxu0 %v2372_v32  ;;  %v2154_v32 = vcombine.low %v1049_v29, %v1053_v30 }
  0x7f   :  { %524 = vmatpush1.bf16.msra.mxu0 %v2370_v33  ;;  %v1057_v33 = vld [vmem:[%s3343_s11 + $0x108] sm:$0xff] }
  0x80   :  { %1877 = vmatprep.subr.bf16.mxu0 %v2131_v20  ;;  %v2162_v36 = vcombine.low %v1057_v33, %v1061_v34  ;;  %v1024_v20 = vld [vmem:[%s3343_s11] sm:$0xff] }
  0x81   :  { %v2129_v25 = vcombine.high %v1024_v20, %v1028_v21 }
  0x82   :  { %526 = vmatmul.mubr.bf16.vlgmr.msra.gmra.mrb[0].mxu0 %v118_v35  ;;  %v2163_v35 = vcombine.high %v1057_v33, %v1061_v34 }
  0x83   :  { %1878 = vmatpush1.bf16.msra.mxu0 %v2130_v19 }
  0x84   :  { %1879 = vmatprep.subr.bf16.mxu0 %v2139_v23  ;;  %v2429_v23 = vld [vmem:[%s3342_s9 + $0x10] ss:$8 sps:$4 sm:$0xff]  }
  0x87   :  { %1880 = vmatpush1.bf16.msra.mxu0 %v2138_v24 }
  0x88   :  { %1881 = vmatprep.subr.bf16.mxu0 %v2147_v27  ;;  %v2128_v27 = vcombine.low %v1024_v20, %v1028_v21  ;;  %v1129_v20 = vld [vmem:[%s3343_s11 + $0x348] sm:$0xff] }
  0x8b   :  { %1882 = vmatpush1.bf16.msra.mxu0 %v2146_v28  ;;  %v1044_v28 = vld [vmem:[%s3343_s11 + $0xa0] sm:$0xff] }
  0x8c   :  { %1883 = vmatprep.subr.bf16.mxu0 %v2155_v31  ;;  %v1048_v31 = vld [vmem:[%s3343_s11 + $0xc0] sm:$0xff] }
  0x8f   :  { %1884 = vmatpush1.bf16.msra.mxu0 %v2154_v32  ;;  %v1052_v32 = vld [vmem:[%s3343_s11 + $0xe0] sm:$0xff] }
  0x90   :  { %1885 = vmatprep.subr.bf16.mxu0 %v2163_v35  ;;  %v2153_v34 = vcombine.high %v1048_v31, %v1052_v32  ;;  %v1060_v35 = vld [vmem:[%s3343_s11 + $0x120] sm:$0xff] }
  0x93   :  { %1886 = vmatpush1.bf16.msra.mxu0 %v2162_v36  ;;  %v2152_v36 = vcombine.low %v1048_v31, %v1052_v32  ;;  %v1144_v31 = vld [vmem:[%s3343_s11 + $0x3c0] sm:$0xff] }
  0x94   :  { %1887 = vmatprep.subr.bf16.mxu0 %v2171_v39  ;;  %v1068_v39 = vld [vmem:[%s3343_s11 + $0x160] sm:$0xff] }
  0x95   :  { %v1148_v32 = vld [vmem:[%s3343_s11 + $0x3e0] sm:$0xff] }
  0x97   :  { %1888 = vmatpush1.bf16.msra.mxu0 %v2170_v40 }
 0x155   :  { %v527_v47 = vpop.f32.mrb[0].mxu0 }
 0x156   :  { %v2267_v48 = vadd.f32 %v527_v47, %v125_v45  ;;  %v529_v49 = vpop.f32.mrb[1].mxu0  ;;  %v1077_v45 = vld [vmem:[%s3343_s11 + $0x1a8] sm:$0xff] }
 0x157   :  { %v2268_v50 = vadd.f32 %v529_v49, %v129_v46  ;;  %v531_v51 = vpop.f32.mrb[2].mxu0  ;;  %v2179_v46 = vcombine.high %v1073_v43, %v1077_v45  ;;  %v2178_v47 = vcombine.low %v1073_v43, %v1077_v45  ;;  %v1085_v49 = vld [vmem:[%s3343_s11 + $0x1e8] sm:$0xff]  ;;  %v2169_v43 = vcombine.high %v1064_v38, %v1068_v39  ;;  %v1072_v45 = vld [vmem:[%s3343_s11 + $0x180] sm:$0xff] }
 0x158   :  { %v534_v52 = vmax.f32 %v2267_v48, 0.0  ;;  %v532_v53 = vpop.f32.mrb[3].mxu0  ;;  %v1081_v48 = vld [vmem:[%s3343_s11 + $0x1c8] sm:$0xff] }
 0x159   :  { %v535_v54 = vmax.f32 %v2268_v50, 0.0  ;;  %1889 = vmatprep.subr.bf16.mxu0 %v2179_v46  ;;  %v2187_v50 = vcombine.high %v1081_v48, %v1085_v49  ;;  %v2186_v51 = vcombine.low %v1081_v48, %v1085_v49  ;;  %v1093_v53 = vld [vmem:[%s3343_s11 + $0x228] sm:$0xff]  ;;  %v1076_v46 = vld [vmem:[%s3343_s11 + $0x1a0] sm:$0xff] }
 0x15a   :  { %v568_v56 = vpack.c.bf16 %v534_v52, %v534_v52  ;;  %1890 = vmatpush1.bf16.msra.mxu0 %v2178_v47  ;;  %v1089_v52 = vld [vmem:[%s3343_s11 + $0x208] sm:$0xff]  ;;  %v2168_v47 = vcombine.low %v1064_v38, %v1068_v39  ;;  %v2177_v48 = vcombine.high %v1072_v45, %v1076_v46  ;;  %v1080_v49 = vld [vmem:[%s3343_s11 + $0x1c0] sm:$0xff]  ;;  %v1026_v38 = vld [vmem:[%s3343_s11 + $0x10] sm:$0xff] }
 0x15b   :  { %v569_v55 = vpack.c.bf16 %v535_v54, %v535_v54  ;;  %1891 = vmatprep.subr.bf16.mxu0 %v2187_v50  ;;  %v2195_v54 = vcombine.high %v1089_v52, %v1093_v53  ;;  %v1084_v50 = vld [vmem:[%s3343_s11 + $0x1e0] sm:$0xff]  ;;  %v1030_v39 = vld [vmem:[%s3343_s11 + $0x30] sm:$0xff] }
 0x15d   :  { %774 = vmatprep.mubr.bf16.mxu1 %v569_v55  ;;  %v2194_v55 = vcombine.low %v1089_v52, %v1093_v53  ;;  %v2185_v52 = vcombine.high %v1080_v49, %v1084_v50  ;;  %v1088_v53 = vld [vmem:[%s3343_s11 + $0x200] sm:$0xff] }
 0x15e   :  { %775 = vmatmul.mubr.bf16.vlgmr.msra.gmra.mrb[0].mxu1 %v568_v56  ;;  %1892 = vmatpush1.bf16.msra.mxu0 %v2186_v51  ;;  %v1097_v56 = vld [vmem:[%s3343_s11 + $0x248] sm:$0xff]  ;;  %v2176_v51 = vcombine.low %v1072_v45, %v1076_v46  ;;  %v1031_v45 = vld [vmem:[%s3343_s11 + $0x38] sm:$0xff]  ;;  %v2132_v46 = vcombine.low %v1026_v38, %v1030_v39 }
 0x15f   :  { %2263 = vmatprep.mubr.msk.bf16.mxu1 %vm2439_vm0, %v2438_v57  ;;  %2260 = vmatpush3.bf16.msra.mxu1 %v2421_v58 }
 0x160   :  { %2261 = vmatprep.subr.bf16.mxu1 %v2438_v57  ;;  %v1101_v57 = vld [vmem:[%s3343_s11 + $0x268] sm:$0xff]  ;;  %1893 = vmatprep.subr.bf16.mxu0 %v2195_v54  ;;  %v1092_v54 = vld [vmem:[%s3343_s11 + $0x220] sm:$0xff] }
 0x161   :  { %v2203_v58 = vcombine.high %v1097_v56, %v1101_v57 }
 0x162   :  { %1894 = vmatpush1.bf16.msra.mxu0 %v2194_v55  ;;  %v2184_v55 = vcombine.low %v1080_v49, %v1084_v50  ;;  %v873_v49 = vld [vmem:[%s3345_s8] sm:$0x3] }
 0x163   :  { %2262 = vmatpush3.bf16.msra.mxu1 %v2422_v59  ;;  %v2202_v59 = vcombine.low %v1097_v56, %v1101_v57  ;;  %1895 = vmatprep.subr.bf16.mxu0 %v2203_v58  ;;  %v2193_v56 = vcombine.high %v1088_v53, %v1092_v54  ;;  %v1096_v57 = vld [vmem:[%s3343_s11 + $0x240] sm:$0xff]  ;;  %v878_v50 = vrot.slane %v873_v49, %v2825_v42 }
 0x164   :  { %899 = vmatprep.subr.bf16.mxu1 %v2425_v13  ;;  %v1100_v58 = vld [vmem:[%s3343_s11 + $0x260] sm:$0xff] }
 0x166   :  { %1896 = vmatpush1.bf16.msra.mxu0 %v2202_v59  ;;  %v2192_v59 = vcombine.low %v1088_v53, %v1092_v54 }
 0x231   :  { %v776_v62 = vpop.f32.mrb[0].mxu1 }
 0x232   :  { %v777_v63 = vadd.f32 %v776_v62, %v575_v61  ;;  %v778_v0 = vpop.f32.mrb[1].mxu1  ;;  %v1109_v61 = vld [vmem:[%s3343_s11 + $0x2a8] sm:$0xff] }
 0x233   :  { %v780_v1 = vpop.f32.mrb[2].mxu1  ;;  %v2852_v5 = vadd.f32 %v778_v0, %v579_v4  ;;  %v2211_v62 = vcombine.high %v1105_v60, %v1109_v61  ;;  %v1113_v0 = vld [vmem:[%s3343_s11 + $0x2c8] sm:$0xff] }
 0x234   :  { %796 = vst [vmem:[%s3340_s13] sm:$0xff] %v777_v63  ;;  %v781_v2 = vpop.f32.mrb[3].mxu1  ;;  %v2848_v3 = vpack.c.bf16 %v777_v63, %v777_v63  ;;  %v2210_v63 = vcombine.low %v1105_v60, %v1109_v61  ;;  %v1117_v1 = vld [vmem:[%s3343_s11 + $0x2e8] sm:$0xff]  ;;  %v2201_v60 = vcombine.high %v1096_v57, %v1100_v58  ;;  %v1104_v61 = vld [vmem:[%s3343_s11 + $0x280] sm:$0xff] }
 0x235   :  { %v784_v6 = vsel %vm783_vm1, %v2852_v5, -inf  ;;  %1897 = vmatprep.subr.bf16.mxu0 %v2211_v62  ;;  %v2219_v2 = vcombine.high %v1113_v0, %v1117_v1  ;;  %v2218_v4 = vcombine.low %v1113_v0, %v1117_v1  ;;  %v1108_v62 = vld [vmem:[%s3343_s11 + $0x2a0] sm:$0xff] }
 0x236   :  { %811 = vrot.lane.b32.xlu0 %v2848_v3, %s2440_s5  ;;  %1898 = vmatpush1.bf16.msra.mxu0 %v2210_v63  ;;  %v2200_v63 = vcombine.low %v1096_v57, %v1100_v58  ;;  %v2209_v0 = vcombine.high %v1104_v61, %v1108_v62  ;;  %v1112_v1 = vld [vmem:[%s3343_s11 + $0x2c0] sm:$0xff] }
 0x237   :  { %1899 = vmatprep.subr.bf16.mxu0 %v2219_v2  ;;  %v1116_v2 = vld [vmem:[%s3343_s11 + $0x2e0] sm:$0xff] }
 0x238   :  { %v946_v57 = vld [vmem:[%s3346_s10] sm:$0x3] }
 0x23a   :  { %1900 = vmatpush1.bf16.msra.mxu0 %v2218_v4  ;;  %v2208_v4 = vcombine.low %v1104_v61, %v1108_v62 }
 0x255   :  { %785 = vmax.xlane.f32.xlu0 %v784_v6  ;;  %v2116_v6 = vld [vmem:[%s3344_s6] ss:$0 sm:$0xff] }
 0x2a8   :  { %v812_v7 = vpop.permute.xlu0 %811 }
 0x2a9   :  { %2264 = vmatmul.mubr.msk.bf16.vlgmr.msra.gmra.mrb[4].mxu1 %vm825_vm2, %v812_v7 }
 0x2aa   :  { %900 = vmatpush1.bf16.msra.mxu1 %v2423_v14  ;;  %931 = vmatprep.mubr.bf16.mxu1 %v2441_v16 }
 0x2ab   :  { %981 = vmatprep.subr.bf16.mxu1 %v2428_v15  ;;  %v2426_v15 = vld [vmem:[%s3342_s9] ss:$8 sps:$4 sm:$0xff]  }
 0x2e2   :  { %v786_v8 = vpop.xlane.xlu0 %785 }
 0x2e3   :  { %v787_v9 = vsub.f32 %v2852_v5, %v786_v8 }
 0x2e5   :  { %v788_v10 = vmul.f32 1.442695, %v787_v9 }
 0x2e7   :  { %2432 = vpow2.f32 %v788_v10 }
 0x2f1   :  { %v2858_v11 = vpop.eup %2432 }
 0x2f2   :  { %v790_v12 = vsel %vm783_vm1, %v2858_v11, 0.0 }
 0x2f3   :  { %791 = vadd.xlane.f32.xlu1 %v790_v12 }
 0x37c   :  { %v863_v7 = vpop.f32.mrb[4].mxu1 }
 0x37d   :  { %v864_v8 = vadd.f32 %v2116_v6, %v863_v7  ;;  %v2265_v9 = vpop.f32.mrb[5].mxu1  ;;  %v2217_v6 = vcombine.high %v1112_v1, %v1116_v2  ;;  %v2216_v7 = vcombine.low %v1112_v1, %v1116_v2 }
 0x37e   :  { %v866_v10 = vpop.f32.mrb[6].mxu1  ;;  %v1124_v9 = vld [vmem:[%s3343_s11 + $0x320] sm:$0xff] }
 0x37f   :  { %2434 = vtanh.f32 %v864_v8  ;;  %v2266_v12 = vpop.f32.mrb[7].mxu1  ;;  %v1120_v8 = vld [vmem:[%s3343_s11 + $0x300] sm:$0xff]  ;;  %v1121_v10 = vld [vmem:[%s3343_s11 + $0x308] sm:$0xff] }
 0x380   :  { %v792_v13 = vpop.xlane.xlu1 %791  ;;  %v2225_v12 = vcombine.high %v1120_v8, %v1124_v9 }
 0x381   :  { %2436 = vrcp.f32 %v792_v13  ;;  %v1125_v13 = vld [vmem:[%s3343_s11 + $0x328] sm:$0xff] }
 0x389   :  { %v2435_v14 = vpop.eup %2434 }
 0x38a   :  { %v872_v17 = vpack.c.bf16 %v2435_v14, %v2435_v14  ;;  %v2224_v14 = vcombine.low %v1120_v8, %v1124_v9  ;;  %v1038_v8 = vld [vmem:[%s3343_s11 + $0x70] sm:$0xff]  ;;  %v1035_v9 = vld [vmem:[%s3343_s11 + $0x58] sm:$0xff] }
 0x38b   :  { %v2437_v19 = vpop.eup %2436 }
 0x38c   :  { %v794_v22 = vmul.f32 %v2437_v19, %v2858_v11  ;;  %2122 = vmatmul.mubr.msk.bf16.vlgmr.msra.gmra.mrb[8].mxu1 %vm895_vm3, %v872_v17  ;;  %v1032_v11 = vld [vmem:[%s3343_s11 + $0x40] sm:$0xff]  ;;  %v2227_v17 = vcombine.high %v1121_v10, %v1125_v13 }
 0x38d   :  { %982 = vmatpush1.bf16.msra.mxu1 %v2426_v15  ;;  %1013 = vmatprep.mubr.bf16.mxu1 %v2441_v16  ;;  %v2137_v16 = vcombine.high %v1032_v11, %v1036_v26  ;;  %v2136_v29 = vcombine.low %v1032_v11, %v1036_v26  ;;  %v2226_v15 = vcombine.low %v1121_v10, %v1125_v13  ;;  %v1132_v19 = vld [vmem:[%s3343_s11 + $0x360] sm:$0xff]  ;;  %v1039_v10 = vld [vmem:[%s3343_s11 + $0x78] sm:$0xff] }
 0x38e   :  { %v795_v24 = vsel %vm783_vm1, %v794_v22, %v2852_v5  ;;  %983 = vmatprep.subr.bf16.mxu1 %v2431_v18  ;;  %v1040_v5 = vld [vmem:[%s3343_s11 + $0x80] sm:$0xff]  ;;  %1901 = vmatprep.subr.bf16.mxu0 %v2227_v17  ;;  %v1133_v22 = vld [vmem:[%s3343_s11 + $0x368] sm:$0xff]  ;;  %v2143_v17 = vcombine.high %v1035_v9, %v1039_v10 }
 0x38f   :  { %797 = vst [vmem:[%s3340_s13 + $0x8] sm:$0xff] %v795_v24  ;;  %v2145_v30 = vcombine.high %v1040_v5, %v1044_v28  ;;  %v2144_v33 = vcombine.low %v1040_v5, %v1044_v28  ;;  %v1128_v18 = vld [vmem:[%s3343_s11 + $0x340] sm:$0xff]  ;;  %1902 = vmatpush1.bf16.msra.mxu0 %v2226_v15  ;;  %v2234_v24 = vcombine.low %v1129_v20, %v1133_v22  ;;  %v1141_v5 = vld [vmem:[%s3343_s11 + $0x3a8] sm:$0xff] }
 0x390   :  { %v2233_v21 = vcombine.high %v1128_v18, %v1132_v19  ;;  %v1136_v11 = vld [vmem:[%s3343_s11 + $0x380] sm:$0xff] }
 0x391   :  { %984 = vmatpush1.bf16.msra.mxu1 %v2429_v23  ;;  %v2232_v23 = vcombine.low %v1128_v18, %v1132_v19  ;;  %v1140_v26 = vld [vmem:[%s3343_s11 + $0x3a0] sm:$0xff]  ;;  %v1046_v18 = vld [vmem:[%s3343_s11 + $0xb0] sm:$0xff]  ;;  %v1043_v19 = vld [vmem:[%s3343_s11 + $0x98] sm:$0xff] }
 0x392   :  { %1836 = vmatprep.subr.bf16.mxu1 %v2129_v25  ;;  %v2235_v25 = vcombine.high %v1129_v20, %v1133_v22  ;;  %v2240_v28 = vcombine.low %v1136_v11, %v1140_v26  ;;  %v1047_v20 = vld [vmem:[%s3343_s11 + $0xb8] sm:$0xff]  ;;  %v2142_v22 = vcombine.low %v1035_v9, %v1039_v10  ;;  %v1098_v10 = vld [vmem:[%s3343_s11 + $0x250] sm:$0xff] }
 0x394   :  { %2127 = vmatmul.mubr.msk.bf16.vlgmr.msra.gmra.mrb[12].mxu1 %vm825_vm2, %v2848_v3  ;;  %v1056_v3 = vld [vmem:[%s3343_s11 + $0x100] sm:$0xff]  ;;  %1903 = vmatprep.subr.bf16.mxu0 %v2235_v25  ;;  %v1050_v25 = vld [vmem:[%s3343_s11 + $0xd0] sm:$0xff] }
 0x395   :  { %1837 = vmatpush1.bf16.msra.mxu1 %v2128_v27  ;;  %v2161_v37 = vcombine.high %v1056_v3, %v1060_v35  ;;  %v2160_v40 = vcombine.low %v1056_v3, %v1060_v35  ;;  %1904 = vmatpush1.bf16.msra.mxu0 %v2234_v24  ;;  %v2241_v27 = vcombine.high %v1136_v11, %v1140_v26  ;;  %v1149_v3 = vld [vmem:[%s3343_s11 + $0x3e8] sm:$0xff]  ;;  %v1054_v11 = vld [vmem:[%s3343_s11 + $0xf0] sm:$0xff]  ;;  %v1051_v26 = vld [vmem:[%s3343_s11 + $0xd8] sm:$0xff] }
 0x396   :  { %1838 = vmatprep.subr.bf16.mxu1 %v2137_v16  ;;  %v1137_v16 = vld [vmem:[%s3343_s11 + $0x388] sm:$0xff]  ;;  %v2248_v35 = vcombine.low %v1144_v31, %v1148_v32  ;;  %v2151_v24 = vcombine.high %v1043_v19, %v1047_v20 }
 0x399   :  { %1839 = vmatpush1.bf16.msra.mxu1 %v2136_v29  ;;  %v2242_v29 = vcombine.low %v1137_v16, %v1141_v5 }
 0x39a   :  { %1840 = vmatprep.subr.bf16.mxu1 %v2145_v30  ;;  %v2243_v30 = vcombine.high %v1137_v16, %v1141_v5  ;;  %v2150_v5 = vcombine.low %v1043_v19, %v1047_v20 }
 0x39c   :  { %1905 = vmatprep.subr.bf16.mxu0 %v2243_v30  ;;  %v1058_v30 = vld [vmem:[%s3343_s11 + $0x110] sm:$0xff] }
 0x39d   :  { %1841 = vmatpush1.bf16.msra.mxu1 %v2144_v33  ;;  %v1145_v33 = vld [vmem:[%s3343_s11 + $0x3c8] sm:$0xff]  ;;  %1906 = vmatpush1.bf16.msra.mxu0 %v2242_v29 }
 0x39e   :  { %1842 = vmatprep.subr.bf16.mxu1 %v2153_v34  ;;  %v2249_v34 = vcombine.high %v1144_v31, %v1148_v32  ;;  %v1062_v31 = vld [vmem:[%s3343_s11 + $0x130] sm:$0xff]  ;;  %v1059_v32 = vld [vmem:[%s3343_s11 + $0x118] sm:$0xff] }
 0x3a1   :  { %1843 = vmatpush1.bf16.msra.mxu1 %v2152_v36  ;;  %v2250_v36 = vcombine.low %v1145_v33, %v1149_v3 }
 0x3a2   :  { %1844 = vmatprep.subr.bf16.mxu1 %v2161_v37  ;;  %v2251_v37 = vcombine.high %v1145_v33, %v1149_v3  ;;  %v1063_v33 = vld [vmem:[%s3343_s11 + $0x138] sm:$0xff] }
 0x3a4   :  { %1907 = vmatprep.subr.bf16.mxu0 %v2251_v37  ;;  %v1066_v37 = vld [vmem:[%s3343_s11 + $0x150] sm:$0xff] }
 0x3a5   :  { %1845 = vmatpush1.bf16.msra.mxu1 %v2160_v40  ;;  %v1027_v40 = vld [vmem:[%s3343_s11 + $0x18] sm:$0xff]  ;;  %1908 = vmatpush1.bf16.msra.mxu0 %v2250_v36  ;;  %v2167_v36 = vcombine.high %v1059_v32, %v1063_v33 }
 0x3a6   :  { %1846 = vmatprep.subr.bf16.mxu1 %v2169_v43  ;;  %v2133_v43 = vcombine.high %v1026_v38, %v1030_v39  ;;  %v1070_v38 = vld [vmem:[%s3343_s11 + $0x170] sm:$0xff]  ;;  %v1067_v39 = vld [vmem:[%s3343_s11 + $0x158] sm:$0xff] }
 0x3a9   :  { %1847 = vmatpush1.bf16.msra.mxu1 %v2168_v47  ;;  %v2134_v47 = vcombine.low %v1027_v40, %v1031_v45 }
 0x3aa   :  { %1848 = vmatprep.subr.bf16.mxu1 %v2177_v48  ;;  %v2135_v48 = vcombine.high %v1027_v40, %v1031_v45  ;;  %v1071_v40 = vld [vmem:[%s3343_s11 + $0x178] sm:$0xff]  ;;  %v2166_v45 = vcombine.low %v1059_v32, %v1063_v33 }
 0x3ac   :  { %1959 = vmatprep.subr.bf16.mxu0 %v2135_v48  ;;  %v1074_v48 = vld [vmem:[%s3343_s11 + $0x190] sm:$0xff] }
 0x3ad   :  { %1849 = vmatpush1.bf16.msra.mxu1 %v2176_v51  ;;  %v882_v51 = vrot.slane %v873_v49, %v2831_v44  ;;  %v1078_v49 = vld [vmem:[%s3343_s11 + $0x1b0] sm:$0xff] }
 0x3ae   :  { %1850 = vmatprep.subr.bf16.mxu1 %v2185_v52 }
 0x3b1   :  { %1851 = vmatpush1.bf16.msra.mxu1 %v2184_v55 }
 0x3b2   :  { %1852 = vmatprep.subr.bf16.mxu1 %v2193_v56 }
 0x3b5   :  { %1853 = vmatpush1.bf16.msra.mxu1 %v2192_v59  ;;  %v951_v59 = vrot.slane %v946_v57, %v2825_v42 }
 0x3b6   :  { %1854 = vmatprep.subr.bf16.mxu1 %v2201_v60  ;;  %v955_v60 = vrot.slane %v946_v57, %v2831_v44  ;;  %v1086_v57 = vld [vmem:[%s3343_s11 + $0x1f0] sm:$0xff] }
 0x3b9   :  { %1855 = vmatpush1.bf16.msra.mxu1 %v2200_v63 }
 0x3ba   :  { %1856 = vmatprep.subr.bf16.mxu1 %v2209_v0 }
 0x3bd   :  { %1857 = vmatpush1.bf16.msra.mxu1 %v2208_v4 }
 0x3be   :  { %1858 = vmatprep.subr.bf16.mxu1 %v2217_v6 }
 0x3c1   :  { %1859 = vmatpush1.bf16.msra.mxu1 %v2216_v7  ;;  %v1034_v7 = vld [vmem:[%s3343_s11 + $0x50] sm:$0xff] }
 0x3c2   :  { %1860 = vmatprep.subr.bf16.mxu1 %v2225_v12  ;;  %v2141_v15 = vcombine.high %v1034_v7, %v1038_v8 }
 0x3c5   :  { %1861 = vmatpush1.bf16.msra.mxu1 %v2224_v14  ;;  %v1042_v14 = vld [vmem:[%s3343_s11 + $0x90] sm:$0xff] }
 0x3c6   :  { %1862 = vmatprep.subr.bf16.mxu1 %v2233_v21  ;;  %v2140_v21 = vcombine.low %v1034_v7, %v1038_v8  ;;  %v2148_v16 = vcombine.low %v1042_v14, %v1046_v18 }
 0x3c9   :  { %1863 = vmatpush1.bf16.msra.mxu1 %v2232_v23  ;;  %v2149_v23 = vcombine.high %v1042_v14, %v1046_v18  ;;  %v1099_v14 = vld [vmem:[%s3343_s11 + $0x258] sm:$0xff] }
 0x3ca   :  { %1864 = vmatprep.subr.bf16.mxu1 %v2241_v27  ;;  %v1055_v27 = vld [vmem:[%s3343_s11 + $0xf8] sm:$0xff] }
 0x3cb   :  { %v2159_v29 = vcombine.high %v1051_v26, %v1055_v27  ;;  %v2158_v3 = vcombine.low %v1051_v26, %v1055_v27 }
 0x3cd   :  { %1865 = vmatpush1.bf16.msra.mxu1 %v2240_v28  ;;  %v2157_v28 = vcombine.high %v1050_v25, %v1054_v11 }
 0x3ce   :  { %1866 = vmatprep.subr.bf16.mxu1 %v2249_v34  ;;  %v2156_v34 = vcombine.low %v1050_v25, %v1054_v11 }
 0x3d1   :  { %1867 = vmatpush1.bf16.msra.mxu1 %v2248_v35  ;;  %v2165_v35 = vcombine.high %v1058_v30, %v1062_v31 }
 0x3d2   :  { %1918 = vmatprep.subr.bf16.mxu1 %v2133_v43  ;;  %v2164_v43 = vcombine.low %v1058_v30, %v1062_v31 }
 0x45f   :  { %v933_v52 = vpop.f32.mrb[8].mxu1 }
 0x460   :  { %v934_v53 = vadd.f32 %v933_v52, %v878_v50  ;;  %v935_v54 = vpop.f32.mrb[9].mxu1  ;;  %v1075_v50 = vld [vmem:[%s3343_s11 + $0x198] sm:$0xff]  ;;  %v2172_v52 = vcombine.low %v1066_v37, %v1070_v38 }
 0x461   :  { %v936_v55 = vadd.f32 %v935_v54, %v882_v51  ;;  %v937_v56 = vpop.f32.mrb[10].mxu1  ;;  %v1079_v51 = vld [vmem:[%s3343_s11 + $0x1b8] sm:$0xff]  ;;  %v2181_v54 = vcombine.high %v1074_v48, %v1078_v49 }
 0x462   :  { %940 = vst [vmem:[%s3347_s14] sm:$0xff] %v934_v53  ;;  %v938_v58 = vpop.f32.mrb[11].mxu1  ;;  %v2174_v53 = vcombine.low %v1067_v39, %v1071_v40  ;;  %v1082_v56 = vld [vmem:[%s3343_s11 + $0x1d0] sm:$0xff] }
 0x463   :  { %941 = vst [vmem:[%s3347_s14 + $0x8] sm:$0xff] %v936_v55  ;;  %v2183_v55 = vcombine.high %v1075_v50, %v1079_v51  ;;  %v1083_v58 = vld [vmem:[%s3343_s11 + $0x1d8] sm:$0xff] }
 0x467   :  { %v1015_v61 = vpop.f32.mrb[12].mxu1 }
 0x468   :  { %v1016_v62 = vadd.f32 %v1015_v61, %v951_v59  ;;  %v1017_v63 = vpop.f32.mrb[13].mxu1  ;;  %v1087_v59 = vld [vmem:[%s3343_s11 + $0x1f8] sm:$0xff]  ;;  %v2182_v61 = vcombine.low %v1075_v50, %v1079_v51 }
 0x469   :  { %v1018_v0 = vadd.f32 %v1017_v63, %v955_v60  ;;  %v1019_v1 = vpop.f32.mrb[14].mxu1  ;;  %v2180_v60 = vcombine.low %v1074_v48, %v1078_v49  ;;  %v2191_v63 = vcombine.high %v1083_v58, %v1087_v59  ;;  %v2190_v7 = vcombine.low %v1083_v58, %v1087_v59 }
 0x46a   :  { %v1022_v2 = vmax.f32 %v1016_v62, 0.0  ;;  %v1020_v4 = vpop.f32.mrb[15].mxu1  ;;  %v2189_v62 = vcombine.high %v1082_v56, %v1086_v57  ;;  %v1094_v1 = vld [vmem:[%s3343_s11 + $0x230] sm:$0xff] }
 0x46b   :  { %v1023_v6 = vmax.f32 %v1018_v0, 0.0  ;;  %v1090_v0 = vld [vmem:[%s3343_s11 + $0x210] sm:$0xff]  ;;  %v1095_v4 = vld [vmem:[%s3343_s11 + $0x238] sm:$0xff] }
 0x46c   :  { %v3125_v13 = vpack.c.bf16 %v1022_v2, %v1022_v2  ;;  %v1091_v2 = vld [vmem:[%s3343_s11 + $0x218] sm:$0xff]  ;;  %v2197_v8 = vcombine.high %v1090_v0, %v1094_v1 }
 0x46d   :  { %v1153_v12 = vpack.c.bf16 %v1023_v6, %v1023_v6  ;;  %v2188_v6 = vcombine.low %v1082_v56, %v1086_v57  ;;  %v2199_v9 = vcombine.high %v1091_v2, %v1095_v4  ;;  %v2198_v18 = vcombine.low %v1091_v2, %v1095_v4 }
 0x46f   :  { %1868 = vmatprep.mubr.bf16.mxu1 %v1153_v12  ;;  %1909 = vmatprep.mubr.bf16.mxu0 %v1153_v12 }
 0x470   :  { %1869 = vmatmul.mubr.bf16.vlgmr.msra.gmra.mrb[16].mxu1 %v3125_v13  ;;  %1910 = vmatmul.mubr.bf16.vlgmr.msra.gmra.mrb[4].mxu0 %v3125_v13 }
 0x471   :  { %1919 = vmatpush1.bf16.msra.mxu1 %v2132_v46  ;;  %1960 = vmatpush1.bf16.msra.mxu0 %v2134_v47  ;;  %v2173_v46 = vcombine.high %v1066_v37, %v1070_v38  ;;  %v2175_v47 = vcombine.high %v1067_v39, %v1071_v40 }
 0x472   :  { %1950 = vmatprep.mubr.bf16.mxu1 %v1153_v12  ;;  %1991 = vmatprep.mubr.bf16.mxu0 %v1153_v12  ;;  %v1102_v12 = vld [vmem:[%s3343_s11 + $0x270] sm:$0xff] }
 0x473   :  { %1920 = vmatprep.subr.bf16.mxu1 %v2141_v15  ;;  %1961 = vmatprep.subr.bf16.mxu0 %v2143_v17  ;;  %v1103_v15 = vld [vmem:[%s3343_s11 + $0x278] sm:$0xff]  ;;  %v2196_v17 = vcombine.low %v1090_v0, %v1094_v1  ;;  %v2205_v19 = vcombine.high %v1098_v10, %v1102_v12  ;;  %v2204_v25 = vcombine.low %v1098_v10, %v1102_v12  ;;  %v1170_v10 = vsub.s32 3, %v2822_v41 }
 0x474   :  { %v2207_v20 = vcombine.high %v1099_v14, %v1103_v15  ;;  %v2206_v11 = vcombine.low %v1099_v14, %v1103_v15 }
 0x475   :  { %1921 = vmatpush1.bf16.msra.mxu1 %v2140_v21  ;;  %1962 = vmatpush1.bf16.msra.mxu0 %v2142_v22  ;;  %v1106_v21 = vld [vmem:[%s3343_s11 + $0x290] sm:$0xff] }
 0x476   :  { %1922 = vmatprep.subr.bf16.mxu1 %v2149_v23  ;;  %1963 = vmatprep.subr.bf16.mxu0 %v2151_v24  ;;  %v1110_v22 = vld [vmem:[%s3343_s11 + $0x2b0] sm:$0xff]  ;;  %v1107_v23 = vld [vmem:[%s3343_s11 + $0x298] sm:$0xff] }
 0x477   :  { %v1111_v24 = vld [vmem:[%s3343_s11 + $0x2b8] sm:$0xff]  ;;  %v2213_v26 = vcombine.high %v1106_v21, %v1110_v22  ;;  %v2212_v30 = vcombine.low %v1106_v21, %v1110_v22 }
 0x478   :  { %v2215_v27 = vcombine.high %v1107_v23, %v1111_v24  ;;  %v2214_v31 = vcombine.low %v1107_v23, %v1111_v24 }
 0x479   :  { %1923 = vmatpush1.bf16.msra.mxu1 %v2148_v16  ;;  %1964 = vmatpush1.bf16.msra.mxu0 %v2150_v5  ;;  %v1114_v16 = vld [vmem:[%s3343_s11 + $0x2d0] sm:$0xff] }
 0x47a   :  { %1924 = vmatprep.subr.bf16.mxu1 %v2157_v28  ;;  %1965 = vmatprep.subr.bf16.mxu0 %v2159_v29  ;;  %v1118_v5 = vld [vmem:[%s3343_s11 + $0x2f0] sm:$0xff]  ;;  %v1115_v28 = vld [vmem:[%s3343_s11 + $0x2d8] sm:$0xff] }
 0x47b   :  { %v1119_v29 = vld [vmem:[%s3343_s11 + $0x2f8] sm:$0xff]  ;;  %v2221_v32 = vcombine.high %v1114_v16, %v1118_v5  ;;  %v2220_v37 = vcombine.low %v1114_v16, %v1118_v5  ;;  %v1178_v16 = vsub.s32 5, %v2822_v41  ;;  %v1186_v5 = vsub.s32 7, %v2822_v41 }
 0x47c   :  { %v2223_v33 = vcombine.high %v1115_v28, %v1119_v29  ;;  %v2222_v38 = vcombine.low %v1115_v28, %v1119_v29 }
 0x47d   :  { %1925 = vmatpush1.bf16.msra.mxu1 %v2156_v34  ;;  %1966 = vmatpush1.bf16.msra.mxu0 %v2158_v3  ;;  %v1122_v34 = vld [vmem:[%s3343_s11 + $0x310] sm:$0xff] }
 0x47e   :  { %1926 = vmatprep.subr.bf16.mxu1 %v2165_v35  ;;  %1967 = vmatprep.subr.bf16.mxu0 %v2167_v36  ;;  %v1126_v3 = vld [vmem:[%s3343_s11 + $0x330] sm:$0xff]  ;;  %v1123_v35 = vld [vmem:[%s3343_s11 + $0x318] sm:$0xff] }
 0x47f   :  { %v1127_v36 = vld [vmem:[%s3343_s11 + $0x338] sm:$0xff]  ;;  %v2229_v39 = vcombine.high %v1122_v34, %v1126_v3  ;;  %v2228_v48 = vcombine.low %v1122_v34, %v1126_v3 }
 0x480   :  { %v2231_v40 = vcombine.high %v1123_v35, %v1127_v36  ;;  %v2230_v49 = vcombine.low %v1123_v35, %v1127_v36 }
 0x481   :  { %1927 = vmatpush1.bf16.msra.mxu1 %v2164_v43  ;;  %1968 = vmatpush1.bf16.msra.mxu0 %v2166_v45  ;;  %v1130_v43 = vld [vmem:[%s3343_s11 + $0x350] sm:$0xff] }
 0x482   :  { %1928 = vmatprep.subr.bf16.mxu1 %v2173_v46  ;;  %1969 = vmatprep.subr.bf16.mxu0 %v2175_v47  ;;  %v1134_v45 = vld [vmem:[%s3343_s11 + $0x370] sm:$0xff]  ;;  %v1131_v46 = vld [vmem:[%s3343_s11 + $0x358] sm:$0xff] }
 0x483   :  { %v1135_v47 = vld [vmem:[%s3343_s11 + $0x378] sm:$0xff]  ;;  %v2237_v50 = vcombine.high %v1130_v43, %v1134_v45  ;;  %v2236_v56 = vcombine.low %v1130_v43, %v1134_v45 }
 0x484   :  { %v2239_v51 = vcombine.high %v1131_v46, %v1135_v47  ;;  %v2238_v57 = vcombine.low %v1131_v46, %v1135_v47 }
 0x485   :  { %1929 = vmatpush1.bf16.msra.mxu1 %v2172_v52  ;;  %1970 = vmatpush1.bf16.msra.mxu0 %v2174_v53  ;;  %v1138_v52 = vld [vmem:[%s3343_s11 + $0x390] sm:$0xff] }
 0x486   :  { %1930 = vmatprep.subr.bf16.mxu1 %v2181_v54  ;;  %1971 = vmatprep.subr.bf16.mxu0 %v2183_v55  ;;  %v1142_v53 = vld [vmem:[%s3343_s11 + $0x3b0] sm:$0xff]  ;;  %v1139_v54 = vld [vmem:[%s3343_s11 + $0x398] sm:$0xff] }
 0x487   :  { %v1143_v55 = vld [vmem:[%s3343_s11 + $0x3b8] sm:$0xff]  ;;  %v2245_v58 = vcombine.high %v1138_v52, %v1142_v53  ;;  %v2244_v0 = vcombine.low %v1138_v52, %v1142_v53 }
 0x488   :  { %v2247_v59 = vcombine.high %v1139_v54, %v1143_v55  ;;  %v2246_v1 = vcombine.low %v1139_v54, %v1143_v55 }
 0x489   :  { %1931 = vmatpush1.bf16.msra.mxu1 %v2180_v60  ;;  %1972 = vmatpush1.bf16.msra.mxu0 %v2182_v61  ;;  %v1146_v60 = vld [vmem:[%s3343_s11 + $0x3d0] sm:$0xff] }
 0x48a   :  { %1932 = vmatprep.subr.bf16.mxu1 %v2189_v62  ;;  %1973 = vmatprep.subr.bf16.mxu0 %v2191_v63  ;;  %v1150_v61 = vld [vmem:[%s3343_s11 + $0x3f0] sm:$0xff]  ;;  %v1147_v62 = vld [vmem:[%s3343_s11 + $0x3d8] sm:$0xff] }
 0x48b   :  { %v1151_v63 = vld [vmem:[%s3343_s11 + $0x3f8] sm:$0xff]  ;;  %v2253_v2 = vcombine.high %v1146_v60, %v1150_v61 }
 0x48c   :  { %v2255_v4 = vcombine.high %v1147_v62, %v1151_v63 }
 0x48d   :  { %1933 = vmatpush1.bf16.msra.mxu1 %v2188_v6  ;;  %1974 = vmatpush1.bf16.msra.mxu0 %v2190_v7  ;;  %v2252_v6 = vcombine.low %v1146_v60, %v1150_v61  ;;  %v2254_v7 = vcombine.low %v1147_v62, %v1151_v63 }
 0x48e   :  { %1934 = vmatprep.subr.bf16.mxu1 %v2197_v8  ;;  %1975 = vmatprep.subr.bf16.mxu0 %v2199_v9  ;;  %v1166_v8 = vsub.s32 2, %v2822_v41  ;;  %v1154_v9 = vld [vmem:[%s3348_s12] sm:$0xff] }
 0x48f   :  { %v1159_v12 = vrot.slane %v1154_v9, %v2825_v42  ;;  %v1163_v15 = vrot.slane %v1154_v9, %v2831_v44 }
 0x490   :  { %v1167_v14 = vrot.slane %v1154_v9, %v1166_v8 }
 0x491   :  { %1935 = vmatpush1.bf16.msra.mxu1 %v2196_v17  ;;  %1976 = vmatpush1.bf16.msra.mxu0 %v2198_v18  ;;  %v1171_v17 = vrot.slane %v1154_v9, %v1170_v10 }
 0x492   :  { %1936 = vmatprep.subr.bf16.mxu1 %v2205_v19  ;;  %1977 = vmatprep.subr.bf16.mxu0 %v2207_v20 }
 0x495   :  { %1937 = vmatpush1.bf16.msra.mxu1 %v2204_v25  ;;  %1978 = vmatpush1.bf16.msra.mxu0 %v2206_v11 }
 0x496   :  { %1938 = vmatprep.subr.bf16.mxu1 %v2213_v26  ;;  %1979 = vmatprep.subr.bf16.mxu0 %v2215_v27  ;;  %v1174_v26 = vsub.s32 4, %v2822_v41  ;;  %v1182_v27 = vsub.s32 6, %v2822_v41 }
 0x498   :  { %v1175_v28 = vrot.slane %v1154_v9, %v1174_v26  ;;  %v1183_v29 = vrot.slane %v1154_v9, %v1182_v27 }
 0x499   :  { %1939 = vmatpush1.bf16.msra.mxu1 %v2212_v30  ;;  %1980 = vmatpush1.bf16.msra.mxu0 %v2214_v31  ;;  %v1179_v30 = vrot.slane %v1154_v9, %v1178_v16  ;;  %v1187_v31 = vrot.slane %v1154_v9, %v1186_v5 }
 0x49a   :  { %1940 = vmatprep.subr.bf16.mxu1 %v2221_v32  ;;  %1981 = vmatprep.subr.bf16.mxu0 %v2223_v33 }
 0x49d   :  { %1941 = vmatpush1.bf16.msra.mxu1 %v2220_v37  ;;  %1982 = vmatpush1.bf16.msra.mxu0 %v2222_v38 }
 0x49e   :  { %1942 = vmatprep.subr.bf16.mxu1 %v2229_v39  ;;  %1983 = vmatprep.subr.bf16.mxu0 %v2231_v40 }
 0x4a1   :  { %1943 = vmatpush1.bf16.msra.mxu1 %v2228_v48  ;;  %1984 = vmatpush1.bf16.msra.mxu0 %v2230_v49 }
 0x4a2   :  { %1944 = vmatprep.subr.bf16.mxu1 %v2237_v50  ;;  %1985 = vmatprep.subr.bf16.mxu0 %v2239_v51 }
 0x4a5   :  { %1945 = vmatpush1.bf16.msra.mxu1 %v2236_v56  ;;  %1986 = vmatpush1.bf16.msra.mxu0 %v2238_v57 }
 0x4a6   :  { %1946 = vmatprep.subr.bf16.mxu1 %v2245_v58  ;;  %1987 = vmatprep.subr.bf16.mxu0 %v2247_v59 }
 0x4a9   :  { %1947 = vmatpush1.bf16.msra.mxu1 %v2244_v0  ;;  %1988 = vmatpush1.bf16.msra.mxu0 %v2246_v1 }
 0x4aa   :  { %1948 = vmatprep.subr.bf16.mxu1 %v2253_v2  ;;  %1989 = vmatprep.subr.bf16.mxu0 %v2255_v4 }
 0x4ad   :  { %1949 = vmatpush1.bf16.msra.mxu1 %v2252_v6  ;;  %1990 = vmatpush1.bf16.msra.mxu0 %v2254_v7 }
 0x4b0   :  { %1951 = vmatmul.mubr.bf16.vlgmr.msra.gmra.mrb[20].mxu1 %v3125_v13  ;;  %1992 = vmatmul.mubr.bf16.vlgmr.msra.gmra.mrb[8].mxu0 %v3125_v13 }
 0x543   :  { %v1870_v18 = vpop.f32.mrb[16].mxu1  ;;  %v1911_v19 = vpop.f32.mrb[4].mxu0 }
 0x544   :  { %v1871_v20 = vadd.f32 %v1870_v18, %v1159_v12  ;;  %v1912_v21 = vadd.f32 %v1911_v19, %v1167_v14  ;;  %v1872_v22 = vpop.f32.mrb[17].mxu1  ;;  %v1913_v13 = vpop.f32.mrb[5].mxu0 }
 0x545   :  { %v1873_v23 = vadd.f32 %v1872_v22, %v1163_v15  ;;  %v1914_v24 = vadd.f32 %v1913_v13, %v1171_v17  ;;  %v1874_v25 = vpop.f32.mrb[18].mxu1  ;;  %v1915_v11 = vpop.f32.mrb[6].mxu0 }
 0x546   :  { %2000 = vst [vmem:[%s3349_s15] sm:$0xff] %v1871_v20  ;;  %2002 = vst [vmem:[%s3349_s15 + $0x10] sm:$0xff] %v1912_v21  ;;  %v1875_v42 = vpop.f32.mrb[19].mxu1  ;;  %v1916_v44 = vpop.f32.mrb[7].mxu0 }
 0x547   :  { %2001 = vst [vmem:[%s3349_s15 + $0x8] sm:$0xff] %v1873_v23  ;;  %2003 = vst [vmem:[%s3349_s15 + $0x18] sm:$0xff] %v1914_v24 }
 0x583   :  { %v1952_v32 = vpop.f32.mrb[20].mxu1  ;;  %v1993_v33 = vpop.f32.mrb[8].mxu0 }
 0x584   :  { %v1953_v34 = vadd.f32 %v1952_v32, %v1175_v28  ;;  %v1994_v3 = vadd.f32 %v1993_v33, %v1183_v29  ;;  %v1954_v35 = vpop.f32.mrb[21].mxu1  ;;  %v1995_v36 = vpop.f32.mrb[9].mxu0 }
 0x585   :  { %v1955_v37 = vadd.f32 %v1954_v35, %v1179_v30  ;;  %v1996_v38 = vadd.f32 %v1995_v36, %v1187_v31  ;;  %v1956_v39 = vpop.f32.mrb[22].mxu1  ;;  %v1997_v40 = vpop.f32.mrb[10].mxu0 }
 0x586   :  { %2004 = vst [vmem:[%s3349_s15 + $0x20] sm:$0xff] %v1953_v34  ;;  %2006 = vst [vmem:[%s3349_s15 + $0x30] sm:$0xff] %v1994_v3  ;;  %v1957_v41 = vpop.f32.mrb[23].mxu1  ;;  %v1998_v43 = vpop.f32.mrb[11].mxu0 }
 0x587   :  { %2005 = vst [vmem:[%s3349_s15 + $0x28] sm:$0xff] %v1955_v37  ;;  %2007 = vst [vmem:[%s3349_s15 + $0x38] sm:$0xff] %v1996_v38 }

</bundles_post_ra>
